<compile_context>
chip_gen: v7x
topology: tpu7x:2x2x1
jax: 0.10.0
libtpu: 0.0.40
codegen_flags: <defaults>
</compile_context>

<pallas_src>
import functools

import jax
import jax.numpy as jnp
from jax.experimental import pallas as pl
from jax.experimental.pallas import tpu as pltpu


def _fused_blstm_kernel(x_ref, wih_ref, whh_ref, b_ref,
                        y_ref, h_out_ref, c_out_ref,
                        gx_sc, h_sc, c_sc):
    """Both LSTM directions, time-chunked.

    grid = (2, T // TC):
      axis 0 ("parallel"):  d = 0 forward, d = 1 backward (time-reversed via
                            index_map + in-kernel local index flip)
      axis 1 ("arbitrary"): chunk index in *processing* order (recurrence)

    x_ref   : (TC, B, F)   current time chunk (already the reversed chunk for d==1)
    wih_ref : (F, 4H)      this direction's W_ih^T
    whh_ref : (H, 4H)      this direction's W_hh^T
    b_ref   : (1, 4H)      b_ih + b_hh
    y_ref   : (TC, B, H)   per-timestep hidden outputs (natural time order)
    h_out_ref, c_out_ref : (B, H) final states, written once on the last chunk
    gx_sc   : (TC, B, 4H)  precomputed x-projection for the chunk (VMEM scratch)
    h_sc, c_sc : (B, H)    recurrent state carried across chunks (VMEM scratch)
    """
    d = pl.program_id(0)
    t = pl.program_id(1)
    TC, B, F = x_ref.shape
    H = whh_ref.shape[0]

    @pl.when(t == 0)
    def _():
        h_sc[...] = jnp.zeros_like(h_sc)
        c_sc[...] = jnp.zeros_like(c_sc)

    # ---- Hoisted input projection: one large MXU matmul per time chunk ------
    x2d = x_ref[...].reshape(TC * B, F)
    gx = jnp.dot(x2d, wih_ref[...], preferred_element_type=jnp.float32)
    gx = gx + b_ref[...].astype(jnp.float32)            # bias folded in once
    gx_sc[...] = gx.reshape(TC, B, 4 * H)

    whh = whh_ref[...]                                   # (H, 4H)

    # ---- Serial recurrence over the chunk: only h @ W_hh + elementwise ------
    def step(j, carry):
        h, c = carry
        lt = j + d * (TC - 1 - 2 * j)                    # d==0: j ; d==1: TC-1-j
        g = gx_sc[lt] + jnp.dot(h.astype(whh.dtype), whh,
                                preferred_element_type=jnp.float32)  # (B, 4H)
        # PyTorch LSTM gate order: i, f, g, o
        i_g = jax.nn.sigmoid(g[:, 0 * H:1 * H])
        f_g = jax.nn.sigmoid(g[:, 1 * H:2 * H])
        g_g = jnp.tanh(g[:, 2 * H:3 * H])
        o_g = jax.nn.sigmoid(g[:, 3 * H:4 * H])
        c_new = f_g * c + i_g * g_g
        h_new = o_g * jnp.tanh(c_new)
        y_ref[lt] = h_new.astype(y_ref.dtype)
        return h_new, c_new

    h_fin, c_fin = jax.lax.fori_loop(0, TC, step, (h_sc[...], c_sc[...]),
                                     unroll=True)
    h_sc[...] = h_fin
    c_sc[...] = c_fin

    # Final states: write once on the last processed chunk (not every step).
    @pl.when(t == pl.num_programs(1) - 1)
    def _():
        h_out_ref[...] = h_fin.astype(h_out_ref.dtype)
        c_out_ref[...] = c_fin.astype(c_out_ref.dtype)


def _pick_time_chunk(T, target):
    """Largest divisor of T not exceeding `target` (>= 1)."""
    tc = max(1, min(T, target))
    while T % tc:
        tc -= 1
    return tc


@functools.partial(jax.jit,
                   static_argnames=("hidden_dim", "time_chunk", "matmul_dtype"))
def pblstm_forward(x, params, hidden_dim, time_chunk=16,
                   matmul_dtype=jnp.float32):
    """x: (B, T, F) batch-first, like the PyTorch module.

    Returns (output, (h_n, c_n)) with
      output: (B, T//2, hidden_dim)
      h_n, c_n: (2, B, hidden_dim//4)   [directions: forward, backward]

    Set matmul_dtype=jnp.bfloat16 on v6e/v7x for faster MXU matmuls (state /
    gates / accumulation stay float32).
    """
    B, T, F = x.shape
    assert T % 2 == 0, "pBLSTM requires an even number of timesteps"
    assert hidden_dim % 4 == 0, "hidden_dim must be divisible by 4"
    H = hidden_dim // 4

    TC = _pick_time_chunk(T, time_chunk)
    nC = T // TC

    # Stack per-direction weights: index 0 = forward, 1 = backward.
    wih = jnp.stack([params["w_ih_f"].T,
                     params["w_ih_b"].T]).astype(matmul_dtype)        # (2, F, 4H)
    whh = jnp.stack([params["w_hh_f"].T,
                     params["w_hh_b"].T]).astype(matmul_dtype)        # (2, H, 4H)
    bias = jnp.stack([
        (params["b_ih_f"] + params["b_hh_f"]).reshape(1, 4 * H),
        (params["b_ih_b"] + params["b_hh_b"]).reshape(1, 4 * H),
    ]).astype(jnp.float32)                                            # (2, 1, 4H)

    x_tbf = jnp.transpose(x, (1, 0, 2)).astype(matmul_dtype)          # (T, B, F)

    # Time reversal for d==1 is pure DMA addressing: chunk nC-1-t.
    def x_map(d, t):
        return (t + d * (nC - 1 - 2 * t), 0, 0)

    def w_map(d, t):
        return (d, 0, 0)

    def y_map(d, t):
        return (d, t + d * (nC - 1 - 2 * t), 0, 0)

    def s_map(d, t):
        return (d, 0, 0)

    y, h_n, c_n = pl.pallas_call(
        _fused_blstm_kernel,
        out_shape=(
            jax.ShapeDtypeStruct((2, T, B, H), jnp.float32),          # y per dir
            jax.ShapeDtypeStruct((2, B, H), jnp.float32),             # h_n
            jax.ShapeDtypeStruct((2, B, H), jnp.float32),             # c_n
        ),
        grid_spec=pltpu.PrefetchScalarGridSpec(
            num_scalar_prefetch=0,
            grid=(2, nC),
            in_specs=[
                pl.BlockSpec((TC, B, F), x_map),
                pl.BlockSpec((None, F, 4 * H), w_map),
                pl.BlockSpec((None, H, 4 * H), w_map),
                pl.BlockSpec((None, 1, 4 * H), w_map),
            ],
            out_specs=(
                pl.BlockSpec((None, TC, B, H), y_map),
                pl.BlockSpec((None, B, H), s_map),
                pl.BlockSpec((None, B, H), s_map),
            ),
            scratch_shapes=[
                pltpu.VMEM((TC, B, 4 * H), jnp.float32),   # chunk x-projection
                pltpu.VMEM((B, H), jnp.float32),           # h state
                pltpu.VMEM((B, H), jnp.float32),           # c state
            ],
        ),
        compiler_params=pltpu.CompilerParams(
            # direction axis independent (split across v7x's 2 TensorCores);
            # the time axis is the recurrence and must stay sequential.
            dimension_semantics=("parallel", "arbitrary")),
    )(x_tbf, wih, whh, bias)

    # Assemble (B, T//2, hidden_dim):
    #   out[b, t2] = [fwd(2t2) | bwd(2t2) | fwd(2t2+1) | bwd(2t2+1)]
    out = jnp.transpose(y, (2, 1, 0, 3)).reshape(B, T // 2, hidden_dim)
    return out, (h_n, c_n)


def init_pblstm_params(key, input_feature_dim, hidden_dim):
    """Deterministic params matching nn.LSTM(input_feature_dim, hidden_dim//4,
    bidirectional=True) init: U(-1/sqrt(H), 1/sqrt(H))."""
    H = hidden_dim // 4
    bound = 1.0 / jnp.sqrt(jnp.float32(H))
    names = ["w_ih_f", "w_hh_f", "b_ih_f", "b_hh_f",
             "w_ih_b", "w_hh_b", "b_ih_b", "b_hh_b"]
    shapes = [(4 * H, input_feature_dim), (4 * H, H), (4 * H,), (4 * H,),
              (4 * H, input_feature_dim), (4 * H, H), (4 * H,), (4 * H,)]
    keys = jax.random.split(key, len(names))
    return {n: jax.random.uniform(k, s, jnp.float32, -bound, bound)
            for n, s, k in zip(names, shapes, keys)}


# ----------------------------- pure-JAX reference ----------------------------
def _lstm_ref_direction(x_tbf, w_ih, w_hh, b_ih, b_hh, reverse):
    T, B, F = x_tbf.shape
    H = w_hh.shape[1]
    xs = x_tbf[::-1] if reverse else x_tbf

    def step(carry, x_t):
        h, c = carry
        g = x_t @ w_ih.T + h @ w_hh.T + b_ih + b_hh
        i = jax.nn.sigmoid(g[:, 0 * H:1 * H])
        f = jax.nn.sigmoid(g[:, 1 * H:2 * H])
        gg = jnp.tanh(g[:, 2 * H:3 * H])
        o = jax.nn.sigmoid(g[:, 3 * H:4 * H])
        c = f * c + i * gg
        h = o * jnp.tanh(c)
        return (h, c), h

    init = (jnp.zeros((B, H), jnp.float32), jnp.zeros((B, H), jnp.float32))
    (h_n, c_n), ys = jax.lax.scan(step, init, xs)
    if reverse:
        ys = ys[::-1]
    return ys, h_n, c_n


def pblstm_reference(x, params, hidden_dim):
    B, T, _ = x.shape
    x_tbf = jnp.transpose(x, (1, 0, 2)).astype(jnp.float32)
    yf, hf, cf = _lstm_ref_direction(x_tbf, params["w_ih_f"], params["w_hh_f"],
                                     params["b_ih_f"], params["b_hh_f"], False)
    yb, hb, cb = _lstm_ref_direction(x_tbf, params["w_ih_b"], params["w_hh_b"],
                                     params["b_ih_b"], params["b_hh_b"], True)
    out = jnp.concatenate([yf, yb], axis=-1)            # (T, B, 2H)
    out = jnp.transpose(out, (1, 0, 2)).reshape(B, T // 2, hidden_dim)
    return out, (jnp.stack([hf, hb]), jnp.stack([cf, cb]))


if __name__ == "__main__":
    # small shapes consistent with the module's forward
    B, T, F = 2, 8, 16          # batch, timesteps (even), input_feature_dim
    hidden_dim = 32             # per-direction LSTM hidden = hidden_dim // 4 = 8

    key = jax.random.PRNGKey(0)
    k_x, k_p = jax.random.split(key)
    x = jax.random.normal(k_x, (B, T, F), jnp.float32)
    params = init_pblstm_params(k_p, F, hidden_dim)

    output, (h_n, c_n) = pblstm_forward(x, params, hidden_dim)
    jax.block_until_ready(output)
    jax.block_until_ready(h_n)
    jax.block_until_ready(c_n)

    assert output.shape == (B, T // 2, hidden_dim), output.shape
    assert h_n.shape == (2, B, hidden_dim // 4), h_n.shape
    assert c_n.shape == (2, B, hidden_dim // 4), c_n.shape

    # numerical check against a plain-JAX LSTM reference (generous tolerance
    # to stay robust to MXU matmul precision)
    ref_out, (ref_h, ref_c) = pblstm_reference(x, params, hidden_dim)
    assert bool(jnp.allclose(output, ref_out, atol=1e-2)), \
        float(jnp.max(jnp.abs(output - ref_out)))
    assert bool(jnp.allclose(h_n, ref_h, atol=1e-2))
    assert bool(jnp.allclose(c_n, ref_c, atol=1e-2))

    print("KERNEL_OK")
</pallas_src>

<mosaic_0001>
module attributes {stable_mosaic.version = 11 : i64} {
  func.func @_fused_blstm_kernel(%arg0: i32, %arg1: i32, %arg2: memref<8x2x16xf32, #tpu.memory_space<vmem>>, %arg3: memref<1x16x32xf32, #tpu.memory_space<vmem>>, %arg4: memref<1x8x32xf32, #tpu.memory_space<vmem>>, %arg5: memref<1x1x32xf32, #tpu.memory_space<vmem>>, %arg6: memref<1x8x2x8xf32, #tpu.memory_space<vmem>>, %arg7: memref<1x2x8xf32, #tpu.memory_space<vmem>>, %arg8: memref<1x2x8xf32, #tpu.memory_space<vmem>>, %arg9: memref<8x2x32xf32, #tpu.memory_space<vmem>>, %arg10: memref<2x8xf32, #tpu.memory_space<vmem>>, %arg11: memref<2x8xf32, #tpu.memory_space<vmem>>) attributes {dimension_semantics = [#tpu.dimension_semantics<parallel>, #tpu.dimension_semantics<arbitrary>], iteration_bounds = array<i64: 2, 1>, scalar_prefetch = 0 : i64, scratch_operands = 3 : i64, tpu.core_type = #tpu.core_type<tc>, window_params = [{transform_indices = @transform_0, window_bounds = array<i64: 8, 2, 16>}, {transform_indices = @transform_1, window_bounds = array<i64: 1, 16, 32>}, {transform_indices = @transform_2, window_bounds = array<i64: 1, 8, 32>}, {transform_indices = @transform_3, window_bounds = array<i64: 1, 1, 32>}, {transform_indices = @transform_4, window_bounds = array<i64: 1, 8, 2, 8>}, {transform_indices = @transform_5, window_bounds = array<i64: 1, 2, 8>}, {transform_indices = @transform_6, window_bounds = array<i64: 1, 2, 8>}]} {
    %c0_i32 = arith.constant 0 : i32
    %0 = arith.cmpi eq, %arg1, %c0_i32 : i32
    %1 = arith.extui %0 : i1 to i32
    %c0_i32_0 = arith.constant 0 : i32
    %2 = arith.cmpi ne, %1, %c0_i32_0 : i32
    scf.if %2 {
      %cst_114 = arith.constant 0.000000e+00 : f32
      %327 = vector.broadcast %cst_114 : f32 to vector<2x8xf32>
      %c0_115 = arith.constant 0 : index
      %c0_116 = arith.constant 0 : index
      %328 = vector.load %arg10[%c0_115, %c0_116] : memref<2x8xf32, #tpu.memory_space<vmem>>, vector<2x8xf32>
      tpu.vector_store %arg10[%c0_115, %c0_116], %327 {strides = array<i32>} : memref<2x8xf32, #tpu.memory_space<vmem>>, vector<2x8xf32>,
      %cst_117 = arith.constant 0.000000e+00 : f32
      %329 = vector.broadcast %cst_117 : f32 to vector<2x8xf32>
      %c0_118 = arith.constant 0 : index
      %c0_119 = arith.constant 0 : index
      %330 = vector.load %arg11[%c0_118, %c0_119] : memref<2x8xf32, #tpu.memory_space<vmem>>, vector<2x8xf32>
      tpu.vector_store %arg11[%c0_118, %c0_119], %329 {strides = array<i32>} : memref<2x8xf32, #tpu.memory_space<vmem>>, vector<2x8xf32>,
    } else {
    }
    %c0 = arith.constant 0 : index
    %c0_1 = arith.constant 0 : index
    %c0_2 = arith.constant 0 : index
    %3 = vector.load %arg2[%c0, %c0_1, %c0_2] : memref<8x2x16xf32, #tpu.memory_space<vmem>>, vector<8x2x16xf32>
    %4 = vector.shape_cast %3 : vector<8x2x16xf32> to vector<16x16xf32>
    %c0_3 = arith.constant 0 : index
    %c0_4 = arith.constant 0 : index
    %c0_5 = arith.constant 0 : index
    %5 = vector.load %arg3[%c0_3, %c0_4, %c0_5] : memref<1x16x32xf32, #tpu.memory_space<vmem>>, vector<1x16x32xf32>
    %6 = vector.shape_cast %5 : vector<1x16x32xf32> to vector<16x32xf32>
    %cst = arith.constant dense<0.000000e+00> : vector<16x32xf32>
    %7 = tpu.matmul %4, %6, %cst {dimension_numbers = #tpu.dot_dimension_numbers<[1], [0], [0], [1], [0, 0, 1, 1], [], []>} : vector<16x16xf32>, vector<16x32xf32>, vector<16x32xf32> -> vector<16x32xf32>
    %c0_6 = arith.constant 0 : index
    %c0_7 = arith.constant 0 : index
    %c0_8 = arith.constant 0 : index
    %8 = vector.load %arg5[%c0_6, %c0_7, %c0_8] : memref<1x1x32xf32, #tpu.memory_space<vmem>>, vector<1x1x32xf32>
    %9 = vector.shape_cast %8 : vector<1x1x32xf32> to vector<1x32xf32>
    %10 = vector.broadcast %9 : vector<1x32xf32> to vector<16x32xf32>
    %11 = arith.addf %7, %10 : vector<16x32xf32>
    %12 = vector.shape_cast %11 : vector<16x32xf32> to vector<8x2x32xf32>
    %c0_9 = arith.constant 0 : index
    %c0_10 = arith.constant 0 : index
    %c0_11 = arith.constant 0 : index
    %13 = vector.load %arg9[%c0_9, %c0_10, %c0_11] : memref<8x2x32xf32, #tpu.memory_space<vmem>>, vector<8x2x32xf32>
    tpu.vector_store %arg9[%c0_9, %c0_10, %c0_11], %12 {strides = array<i32>} : memref<8x2x32xf32, #tpu.memory_space<vmem>>, vector<8x2x32xf32>,
    %c0_12 = arith.constant 0 : index
    %c0_13 = arith.constant 0 : index
    %c0_14 = arith.constant 0 : index
    %14 = vector.load %arg4[%c0_12, %c0_13, %c0_14] : memref<1x8x32xf32, #tpu.memory_space<vmem>>, vector<1x8x32xf32>
    %15 = vector.shape_cast %14 : vector<1x8x32xf32> to vector<8x32xf32>
    %c0_15 = arith.constant 0 : index
    %c0_16 = arith.constant 0 : index
    %16 = vector.load %arg10[%c0_15, %c0_16] : memref<2x8xf32, #tpu.memory_space<vmem>>, vector<2x8xf32>
    %c0_17 = arith.constant 0 : index
    %c0_18 = arith.constant 0 : index
    %17 = vector.load %arg11[%c0_17, %c0_18] : memref<2x8xf32, #tpu.memory_space<vmem>>, vector<2x8xf32>
    %c0_i32_19 = arith.constant 0 : i32
    %c2_i32 = arith.constant 2 : i32
    %18 = arith.muli %c2_i32, %c0_i32_19 : i32
    %c7_i32 = arith.constant 7 : i32
    %19 = arith.subi %c7_i32, %18 : i32
    %20 = arith.muli %arg0, %19 : i32
    %21 = arith.addi %c0_i32_19, %20 : i32
    %22 = arith.index_cast %21 : i32 to index
    %c0_20 = arith.constant 0 : index
    %c0_21 = arith.constant 0 : index
    %23 = vector.load %arg9[%22, %c0_20, %c0_21] : memref<8x2x32xf32, #tpu.memory_space<vmem>>, vector<1x2x32xf32>
    %24 = vector.shape_cast %23 : vector<1x2x32xf32> to vector<2x32xf32>
    %cst_22 = arith.constant dense<0.000000e+00> : vector<2x32xf32>
    %25 = tpu.matmul %16, %15, %cst_22 {dimension_numbers = #tpu.dot_dimension_numbers<[1], [0], [0], [1], [0, 0, 1, 1], [], []>} : vector<2x8xf32>, vector<8x32xf32>, vector<2x32xf32> -> vector<2x32xf32>
    %26 = arith.addf %24, %25 : vector<2x32xf32>
    %27 = vector.extract_strided_slice %26 {offsets = [0, 0], sizes = [2, 8], strides = [1, 1]} : vector<2x32xf32> to vector<2x8xf32>
    %28 = arith.negf %27 : vector<2x8xf32>
    %29 = math.exp %28 : vector<2x8xf32>
    %cst_23 = arith.constant 1.000000e+00 : f32
    %30 = vector.broadcast %cst_23 : f32 to vector<2x8xf32>
    %31 = arith.addf %30, %29 : vector<2x8xf32>
    %32 = arith.divf %30, %31 : vector<2x8xf32>
    %33 = vector.extract_strided_slice %26 {offsets = [0, 8], sizes = [2, 8], strides = [1, 1]} : vector<2x32xf32> to vector<2x8xf32>
    %34 = arith.negf %33 : vector<2x8xf32>
    %35 = math.exp %34 : vector<2x8xf32>
    %cst_24 = arith.constant 1.000000e+00 : f32
    %36 = vector.broadcast %cst_24 : f32 to vector<2x8xf32>
    %37 = arith.addf %36, %35 : vector<2x8xf32>
    %38 = arith.divf %36, %37 : vector<2x8xf32>
    %39 = vector.extract_strided_slice %26 {offsets = [0, 16], sizes = [2, 8], strides = [1, 1]} : vector<2x32xf32> to vector<2x8xf32>
    %40 = math.tanh %39 : vector<2x8xf32>
    %41 = vector.extract_strided_slice %26 {offsets = [0, 24], sizes = [2, 8], strides = [1, 1]} : vector<2x32xf32> to vector<2x8xf32>
    %42 = arith.negf %41 : vector<2x8xf32>
    %43 = math.exp %42 : vector<2x8xf32>
    %cst_25 = arith.constant 1.000000e+00 : f32
    %44 = vector.broadcast %cst_25 : f32 to vector<2x8xf32>
    %45 = arith.addf %44, %43 : vector<2x8xf32>
    %46 = arith.divf %44, %45 : vector<2x8xf32>
    %47 = arith.mulf %38, %17 : vector<2x8xf32>
    %48 = arith.mulf %32, %40 : vector<2x8xf32>
    %49 = arith.addf %47, %48 : vector<2x8xf32>
    %50 = math.tanh %49 : vector<2x8xf32>
    %51 = arith.mulf %46, %50 : vector<2x8xf32>
    %c0_26 = arith.constant 0 : index
    %52 = arith.index_cast %21 : i32 to index
    %c0_27 = arith.constant 0 : index
    %c0_28 = arith.constant 0 : index
    %53 = vector.load %arg6[%c0_26, %52, %c0_27, %c0_28] : memref<1x8x2x8xf32, #tpu.memory_space<vmem>>, vector<1x1x2x8xf32>
    %54 = vector.shape_cast %53 : vector<1x1x2x8xf32> to vector<2x8xf32>
    %55 = vector.shape_cast %51 : vector<2x8xf32> to vector<1x1x2x8xf32>
    tpu.vector_store %arg6[%c0_26, %52, %c0_27, %c0_28], %55 {strides = array<i32>} : memref<1x8x2x8xf32, #tpu.memory_space<vmem>>, vector<1x1x2x8xf32>,
    %c1_i32 = arith.constant 1 : i32
    %c2_i32_29 = arith.constant 2 : i32
    %56 = arith.muli %c2_i32_29, %c1_i32 : i32
    %c7_i32_30 = arith.constant 7 : i32
    %57 = arith.subi %c7_i32_30, %56 : i32
    %58 = arith.muli %arg0, %57 : i32
    %59 = arith.addi %c1_i32, %58 : i32
    %60 = arith.index_cast %59 : i32 to index
    %c0_31 = arith.constant 0 : index
    %c0_32 = arith.constant 0 : index
    %61 = vector.load %arg9[%60, %c0_31, %c0_32] : memref<8x2x32xf32, #tpu.memory_space<vmem>>, vector<1x2x32xf32>
    %62 = vector.shape_cast %61 : vector<1x2x32xf32> to vector<2x32xf32>
    %cst_33 = arith.constant dense<0.000000e+00> : vector<2x32xf32>
    %63 = tpu.matmul %51, %15, %cst_33 {dimension_numbers = #tpu.dot_dimension_numbers<[1], [0], [0], [1], [0, 0, 1, 1], [], []>} : vector<2x8xf32>, vector<8x32xf32>, vector<2x32xf32> -> vector<2x32xf32>
    %64 = arith.addf %62, %63 : vector<2x32xf32>
    %65 = vector.extract_strided_slice %64 {offsets = [0, 0], sizes = [2, 8], strides = [1, 1]} : vector<2x32xf32> to vector<2x8xf32>
    %66 = arith.negf %65 : vector<2x8xf32>
    %67 = math.exp %66 : vector<2x8xf32>
    %cst_34 = arith.constant 1.000000e+00 : f32
    %68 = vector.broadcast %cst_34 : f32 to vector<2x8xf32>
    %69 = arith.addf %68, %67 : vector<2x8xf32>
    %70 = arith.divf %68, %69 : vector<2x8xf32>
    %71 = vector.extract_strided_slice %64 {offsets = [0, 8], sizes = [2, 8], strides = [1, 1]} : vector<2x32xf32> to vector<2x8xf32>
    %72 = arith.negf %71 : vector<2x8xf32>
    %73 = math.exp %72 : vector<2x8xf32>
    %cst_35 = arith.constant 1.000000e+00 : f32
    %74 = vector.broadcast %cst_35 : f32 to vector<2x8xf32>
    %75 = arith.addf %74, %73 : vector<2x8xf32>
    %76 = arith.divf %74, %75 : vector<2x8xf32>
    %77 = vector.extract_strided_slice %64 {offsets = [0, 16], sizes = [2, 8], strides = [1, 1]} : vector<2x32xf32> to vector<2x8xf32>
    %78 = math.tanh %77 : vector<2x8xf32>
    %79 = vector.extract_strided_slice %64 {offsets = [0, 24], sizes = [2, 8], strides = [1, 1]} : vector<2x32xf32> to vector<2x8xf32>
    %80 = arith.negf %79 : vector<2x8xf32>
    %81 = math.exp %80 : vector<2x8xf32>
    %cst_36 = arith.constant 1.000000e+00 : f32
    %82 = vector.broadcast %cst_36 : f32 to vector<2x8xf32>
    %83 = arith.addf %82, %81 : vector<2x8xf32>
    %84 = arith.divf %82, %83 : vector<2x8xf32>
    %85 = arith.mulf %76, %49 : vector<2x8xf32>
    %86 = arith.mulf %70, %78 : vector<2x8xf32>
    %87 = arith.addf %85, %86 : vector<2x8xf32>
    %88 = math.tanh %87 : vector<2x8xf32>
    %89 = arith.mulf %84, %88 : vector<2x8xf32>
    %c0_37 = arith.constant 0 : index
    %90 = arith.index_cast %59 : i32 to index
    %c0_38 = arith.constant 0 : index
    %c0_39 = arith.constant 0 : index
    %91 = vector.load %arg6[%c0_37, %90, %c0_38, %c0_39] : memref<1x8x2x8xf32, #tpu.memory_space<vmem>>, vector<1x1x2x8xf32>
    %92 = vector.shape_cast %91 : vector<1x1x2x8xf32> to vector<2x8xf32>
    %93 = vector.shape_cast %89 : vector<2x8xf32> to vector<1x1x2x8xf32>
    tpu.vector_store %arg6[%c0_37, %90, %c0_38, %c0_39], %93 {strides = array<i32>} : memref<1x8x2x8xf32, #tpu.memory_space<vmem>>, vector<1x1x2x8xf32>,
    %c2_i32_40 = arith.constant 2 : i32
    %c2_i32_41 = arith.constant 2 : i32
    %94 = arith.muli %c2_i32_41, %c2_i32_40 : i32
    %c7_i32_42 = arith.constant 7 : i32
    %95 = arith.subi %c7_i32_42, %94 : i32
    %96 = arith.muli %arg0, %95 : i32
    %97 = arith.addi %c2_i32_40, %96 : i32
    %98 = arith.index_cast %97 : i32 to index
    %c0_43 = arith.constant 0 : index
    %c0_44 = arith.constant 0 : index
    %99 = vector.load %arg9[%98, %c0_43, %c0_44] : memref<8x2x32xf32, #tpu.memory_space<vmem>>, vector<1x2x32xf32>
    %100 = vector.shape_cast %99 : vector<1x2x32xf32> to vector<2x32xf32>
    %cst_45 = arith.constant dense<0.000000e+00> : vector<2x32xf32>
    %101 = tpu.matmul %89, %15, %cst_45 {dimension_numbers = #tpu.dot_dimension_numbers<[1], [0], [0], [1], [0, 0, 1, 1], [], []>} : vector<2x8xf32>, vector<8x32xf32>, vector<2x32xf32> -> vector<2x32xf32>
    %102 = arith.addf %100, %101 : vector<2x32xf32>
    %103 = vector.extract_strided_slice %102 {offsets = [0, 0], sizes = [2, 8], strides = [1, 1]} : vector<2x32xf32> to vector<2x8xf32>
    %104 = arith.negf %103 : vector<2x8xf32>
    %105 = math.exp %104 : vector<2x8xf32>
    %cst_46 = arith.constant 1.000000e+00 : f32
    %106 = vector.broadcast %cst_46 : f32 to vector<2x8xf32>
    %107 = arith.addf %106, %105 : vector<2x8xf32>
    %108 = arith.divf %106, %107 : vector<2x8xf32>
    %109 = vector.extract_strided_slice %102 {offsets = [0, 8], sizes = [2, 8], strides = [1, 1]} : vector<2x32xf32> to vector<2x8xf32>
    %110 = arith.negf %109 : vector<2x8xf32>
    %111 = math.exp %110 : vector<2x8xf32>
    %cst_47 = arith.constant 1.000000e+00 : f32
    %112 = vector.broadcast %cst_47 : f32 to vector<2x8xf32>
    %113 = arith.addf %112, %111 : vector<2x8xf32>
    %114 = arith.divf %112, %113 : vector<2x8xf32>
    %115 = vector.extract_strided_slice %102 {offsets = [0, 16], sizes = [2, 8], strides = [1, 1]} : vector<2x32xf32> to vector<2x8xf32>
    %116 = math.tanh %115 : vector<2x8xf32>
    %117 = vector.extract_strided_slice %102 {offsets = [0, 24], sizes = [2, 8], strides = [1, 1]} : vector<2x32xf32> to vector<2x8xf32>
    %118 = arith.negf %117 : vector<2x8xf32>
    %119 = math.exp %118 : vector<2x8xf32>
    %cst_48 = arith.constant 1.000000e+00 : f32
    %120 = vector.broadcast %cst_48 : f32 to vector<2x8xf32>
    %121 = arith.addf %120, %119 : vector<2x8xf32>
    %122 = arith.divf %120, %121 : vector<2x8xf32>
    %123 = arith.mulf %114, %87 : vector<2x8xf32>
    %124 = arith.mulf %108, %116 : vector<2x8xf32>
    %125 = arith.addf %123, %124 : vector<2x8xf32>
    %126 = math.tanh %125 : vector<2x8xf32>
    %127 = arith.mulf %122, %126 : vector<2x8xf32>
    %c0_49 = arith.constant 0 : index
    %128 = arith.index_cast %97 : i32 to index
    %c0_50 = arith.constant 0 : index
    %c0_51 = arith.constant 0 : index
    %129 = vector.load %arg6[%c0_49, %128, %c0_50, %c0_51] : memref<1x8x2x8xf32, #tpu.memory_space<vmem>>, vector<1x1x2x8xf32>
    %130 = vector.shape_cast %129 : vector<1x1x2x8xf32> to vector<2x8xf32>
    %131 = vector.shape_cast %127 : vector<2x8xf32> to vector<1x1x2x8xf32>
    tpu.vector_store %arg6[%c0_49, %128, %c0_50, %c0_51], %131 {strides = array<i32>} : memref<1x8x2x8xf32, #tpu.memory_space<vmem>>, vector<1x1x2x8xf32>,
    %c3_i32 = arith.constant 3 : i32
    %c2_i32_52 = arith.constant 2 : i32
    %132 = arith.muli %c2_i32_52, %c3_i32 : i32
    %c7_i32_53 = arith.constant 7 : i32
    %133 = arith.subi %c7_i32_53, %132 : i32
    %134 = arith.muli %arg0, %133 : i32
    %135 = arith.addi %c3_i32, %134 : i32
    %136 = arith.index_cast %135 : i32 to index
    %c0_54 = arith.constant 0 : index
    %c0_55 = arith.constant 0 : index
    %137 = vector.load %arg9[%136, %c0_54, %c0_55] : memref<8x2x32xf32, #tpu.memory_space<vmem>>, vector<1x2x32xf32>
    %138 = vector.shape_cast %137 : vector<1x2x32xf32> to vector<2x32xf32>
    %cst_56 = arith.constant dense<0.000000e+00> : vector<2x32xf32>
    %139 = tpu.matmul %127, %15, %cst_56 {dimension_numbers = #tpu.dot_dimension_numbers<[1], [0], [0], [1], [0, 0, 1, 1], [], []>} : vector<2x8xf32>, vector<8x32xf32>, vector<2x32xf32> -> vector<2x32xf32>
    %140 = arith.addf %138, %139 : vector<2x32xf32>
    %141 = vector.extract_strided_slice %140 {offsets = [0, 0], sizes = [2, 8], strides = [1, 1]} : vector<2x32xf32> to vector<2x8xf32>
    %142 = arith.negf %141 : vector<2x8xf32>
    %143 = math.exp %142 : vector<2x8xf32>
    %cst_57 = arith.constant 1.000000e+00 : f32
    %144 = vector.broadcast %cst_57 : f32 to vector<2x8xf32>
    %145 = arith.addf %144, %143 : vector<2x8xf32>
    %146 = arith.divf %144, %145 : vector<2x8xf32>
    %147 = vector.extract_strided_slice %140 {offsets = [0, 8], sizes = [2, 8], strides = [1, 1]} : vector<2x32xf32> to vector<2x8xf32>
    %148 = arith.negf %147 : vector<2x8xf32>
    %149 = math.exp %148 : vector<2x8xf32>
    %cst_58 = arith.constant 1.000000e+00 : f32
    %150 = vector.broadcast %cst_58 : f32 to vector<2x8xf32>
    %151 = arith.addf %150, %149 : vector<2x8xf32>
    %152 = arith.divf %150, %151 : vector<2x8xf32>
    %153 = vector.extract_strided_slice %140 {offsets = [0, 16], sizes = [2, 8], strides = [1, 1]} : vector<2x32xf32> to vector<2x8xf32>
    %154 = math.tanh %153 : vector<2x8xf32>
    %155 = vector.extract_strided_slice %140 {offsets = [0, 24], sizes = [2, 8], strides = [1, 1]} : vector<2x32xf32> to vector<2x8xf32>
    %156 = arith.negf %155 : vector<2x8xf32>
    %157 = math.exp %156 : vector<2x8xf32>
    %cst_59 = arith.constant 1.000000e+00 : f32
    %158 = vector.broadcast %cst_59 : f32 to vector<2x8xf32>
    %159 = arith.addf %158, %157 : vector<2x8xf32>
    %160 = arith.divf %158, %159 : vector<2x8xf32>
    %161 = arith.mulf %152, %125 : vector<2x8xf32>
    %162 = arith.mulf %146, %154 : vector<2x8xf32>
    %163 = arith.addf %161, %162 : vector<2x8xf32>
    %164 = math.tanh %163 : vector<2x8xf32>
    %165 = arith.mulf %160, %164 : vector<2x8xf32>
    %c0_60 = arith.constant 0 : index
    %166 = arith.index_cast %135 : i32 to index
    %c0_61 = arith.constant 0 : index
    %c0_62 = arith.constant 0 : index
    %167 = vector.load %arg6[%c0_60, %166, %c0_61, %c0_62] : memref<1x8x2x8xf32, #tpu.memory_space<vmem>>, vector<1x1x2x8xf32>
    %168 = vector.shape_cast %167 : vector<1x1x2x8xf32> to vector<2x8xf32>
    %169 = vector.shape_cast %165 : vector<2x8xf32> to vector<1x1x2x8xf32>
    tpu.vector_store %arg6[%c0_60, %166, %c0_61, %c0_62], %169 {strides = array<i32>} : memref<1x8x2x8xf32, #tpu.memory_space<vmem>>, vector<1x1x2x8xf32>,
    %c4_i32 = arith.constant 4 : i32
    %c2_i32_63 = arith.constant 2 : i32
    %170 = arith.muli %c2_i32_63, %c4_i32 : i32
    %c7_i32_64 = arith.constant 7 : i32
    %171 = arith.subi %c7_i32_64, %170 : i32
    %172 = arith.muli %arg0, %171 : i32
    %173 = arith.addi %c4_i32, %172 : i32
    %174 = arith.index_cast %173 : i32 to index
    %c0_65 = arith.constant 0 : index
    %c0_66 = arith.constant 0 : index
    %175 = vector.load %arg9[%174, %c0_65, %c0_66] : memref<8x2x32xf32, #tpu.memory_space<vmem>>, vector<1x2x32xf32>
    %176 = vector.shape_cast %175 : vector<1x2x32xf32> to vector<2x32xf32>
    %cst_67 = arith.constant dense<0.000000e+00> : vector<2x32xf32>
    %177 = tpu.matmul %165, %15, %cst_67 {dimension_numbers = #tpu.dot_dimension_numbers<[1], [0], [0], [1], [0, 0, 1, 1], [], []>} : vector<2x8xf32>, vector<8x32xf32>, vector<2x32xf32> -> vector<2x32xf32>
    %178 = arith.addf %176, %177 : vector<2x32xf32>
    %179 = vector.extract_strided_slice %178 {offsets = [0, 0], sizes = [2, 8], strides = [1, 1]} : vector<2x32xf32> to vector<2x8xf32>
    %180 = arith.negf %179 : vector<2x8xf32>
    %181 = math.exp %180 : vector<2x8xf32>
    %cst_68 = arith.constant 1.000000e+00 : f32
    %182 = vector.broadcast %cst_68 : f32 to vector<2x8xf32>
    %183 = arith.addf %182, %181 : vector<2x8xf32>
    %184 = arith.divf %182, %183 : vector<2x8xf32>
    %185 = vector.extract_strided_slice %178 {offsets = [0, 8], sizes = [2, 8], strides = [1, 1]} : vector<2x32xf32> to vector<2x8xf32>
    %186 = arith.negf %185 : vector<2x8xf32>
    %187 = math.exp %186 : vector<2x8xf32>
    %cst_69 = arith.constant 1.000000e+00 : f32
    %188 = vector.broadcast %cst_69 : f32 to vector<2x8xf32>
    %189 = arith.addf %188, %187 : vector<2x8xf32>
    %190 = arith.divf %188, %189 : vector<2x8xf32>
    %191 = vector.extract_strided_slice %178 {offsets = [0, 16], sizes = [2, 8], strides = [1, 1]} : vector<2x32xf32> to vector<2x8xf32>
    %192 = math.tanh %191 : vector<2x8xf32>
    %193 = vector.extract_strided_slice %178 {offsets = [0, 24], sizes = [2, 8], strides = [1, 1]} : vector<2x32xf32> to vector<2x8xf32>
    %194 = arith.negf %193 : vector<2x8xf32>
    %195 = math.exp %194 : vector<2x8xf32>
    %cst_70 = arith.constant 1.000000e+00 : f32
    %196 = vector.broadcast %cst_70 : f32 to vector<2x8xf32>
    %197 = arith.addf %196, %195 : vector<2x8xf32>
    %198 = arith.divf %196, %197 : vector<2x8xf32>
    %199 = arith.mulf %190, %163 : vector<2x8xf32>
    %200 = arith.mulf %184, %192 : vector<2x8xf32>
    %201 = arith.addf %199, %200 : vector<2x8xf32>
    %202 = math.tanh %201 : vector<2x8xf32>
    %203 = arith.mulf %198, %202 : vector<2x8xf32>
    %c0_71 = arith.constant 0 : index
    %204 = arith.index_cast %173 : i32 to index
    %c0_72 = arith.constant 0 : index
    %c0_73 = arith.constant 0 : index
    %205 = vector.load %arg6[%c0_71, %204, %c0_72, %c0_73] : memref<1x8x2x8xf32, #tpu.memory_space<vmem>>, vector<1x1x2x8xf32>
    %206 = vector.shape_cast %205 : vector<1x1x2x8xf32> to vector<2x8xf32>
    %207 = vector.shape_cast %203 : vector<2x8xf32> to vector<1x1x2x8xf32>
    tpu.vector_store %arg6[%c0_71, %204, %c0_72, %c0_73], %207 {strides = array<i32>} : memref<1x8x2x8xf32, #tpu.memory_space<vmem>>, vector<1x1x2x8xf32>,
    %c5_i32 = arith.constant 5 : i32
    %c2_i32_74 = arith.constant 2 : i32
    %208 = arith.muli %c2_i32_74, %c5_i32 : i32
    %c7_i32_75 = arith.constant 7 : i32
    %209 = arith.subi %c7_i32_75, %208 : i32
    %210 = arith.muli %arg0, %209 : i32
    %211 = arith.addi %c5_i32, %210 : i32
    %212 = arith.index_cast %211 : i32 to index
    %c0_76 = arith.constant 0 : index
    %c0_77 = arith.constant 0 : index
    %213 = vector.load %arg9[%212, %c0_76, %c0_77] : memref<8x2x32xf32, #tpu.memory_space<vmem>>, vector<1x2x32xf32>
    %214 = vector.shape_cast %213 : vector<1x2x32xf32> to vector<2x32xf32>
    %cst_78 = arith.constant dense<0.000000e+00> : vector<2x32xf32>
    %215 = tpu.matmul %203, %15, %cst_78 {dimension_numbers = #tpu.dot_dimension_numbers<[1], [0], [0], [1], [0, 0, 1, 1], [], []>} : vector<2x8xf32>, vector<8x32xf32>, vector<2x32xf32> -> vector<2x32xf32>
    %216 = arith.addf %214, %215 : vector<2x32xf32>
    %217 = vector.extract_strided_slice %216 {offsets = [0, 0], sizes = [2, 8], strides = [1, 1]} : vector<2x32xf32> to vector<2x8xf32>
    %218 = arith.negf %217 : vector<2x8xf32>
    %219 = math.exp %218 : vector<2x8xf32>
    %cst_79 = arith.constant 1.000000e+00 : f32
    %220 = vector.broadcast %cst_79 : f32 to vector<2x8xf32>
    %221 = arith.addf %220, %219 : vector<2x8xf32>
    %222 = arith.divf %220, %221 : vector<2x8xf32>
    %223 = vector.extract_strided_slice %216 {offsets = [0, 8], sizes = [2, 8], strides = [1, 1]} : vector<2x32xf32> to vector<2x8xf32>
    %224 = arith.negf %223 : vector<2x8xf32>
    %225 = math.exp %224 : vector<2x8xf32>
    %cst_80 = arith.constant 1.000000e+00 : f32
    %226 = vector.broadcast %cst_80 : f32 to vector<2x8xf32>
    %227 = arith.addf %226, %225 : vector<2x8xf32>
    %228 = arith.divf %226, %227 : vector<2x8xf32>
    %229 = vector.extract_strided_slice %216 {offsets = [0, 16], sizes = [2, 8], strides = [1, 1]} : vector<2x32xf32> to vector<2x8xf32>
    %230 = math.tanh %229 : vector<2x8xf32>
    %231 = vector.extract_strided_slice %216 {offsets = [0, 24], sizes = [2, 8], strides = [1, 1]} : vector<2x32xf32> to vector<2x8xf32>
    %232 = arith.negf %231 : vector<2x8xf32>
    %233 = math.exp %232 : vector<2x8xf32>
    %cst_81 = arith.constant 1.000000e+00 : f32
    %234 = vector.broadcast %cst_81 : f32 to vector<2x8xf32>
    %235 = arith.addf %234, %233 : vector<2x8xf32>
    %236 = arith.divf %234, %235 : vector<2x8xf32>
    %237 = arith.mulf %228, %201 : vector<2x8xf32>
    %238 = arith.mulf %222, %230 : vector<2x8xf32>
    %239 = arith.addf %237, %238 : vector<2x8xf32>
    %240 = math.tanh %239 : vector<2x8xf32>
    %241 = arith.mulf %236, %240 : vector<2x8xf32>
    %c0_82 = arith.constant 0 : index
    %242 = arith.index_cast %211 : i32 to index
    %c0_83 = arith.constant 0 : index
    %c0_84 = arith.constant 0 : index
    %243 = vector.load %arg6[%c0_82, %242, %c0_83, %c0_84] : memref<1x8x2x8xf32, #tpu.memory_space<vmem>>, vector<1x1x2x8xf32>
    %244 = vector.shape_cast %243 : vector<1x1x2x8xf32> to vector<2x8xf32>
    %245 = vector.shape_cast %241 : vector<2x8xf32> to vector<1x1x2x8xf32>
    tpu.vector_store %arg6[%c0_82, %242, %c0_83, %c0_84], %245 {strides = array<i32>} : memref<1x8x2x8xf32, #tpu.memory_space<vmem>>, vector<1x1x2x8xf32>,
    %c6_i32 = arith.constant 6 : i32
    %c2_i32_85 = arith.constant 2 : i32
    %246 = arith.muli %c2_i32_85, %c6_i32 : i32
    %c7_i32_86 = arith.constant 7 : i32
    %247 = arith.subi %c7_i32_86, %246 : i32
    %248 = arith.muli %arg0, %247 : i32
    %249 = arith.addi %c6_i32, %248 : i32
    %250 = arith.index_cast %249 : i32 to index
    %c0_87 = arith.constant 0 : index
    %c0_88 = arith.constant 0 : index
    %251 = vector.load %arg9[%250, %c0_87, %c0_88] : memref<8x2x32xf32, #tpu.memory_space<vmem>>, vector<1x2x32xf32>
    %252 = vector.shape_cast %251 : vector<1x2x32xf32> to vector<2x32xf32>
    %cst_89 = arith.constant dense<0.000000e+00> : vector<2x32xf32>
    %253 = tpu.matmul %241, %15, %cst_89 {dimension_numbers = #tpu.dot_dimension_numbers<[1], [0], [0], [1], [0, 0, 1, 1], [], []>} : vector<2x8xf32>, vector<8x32xf32>, vector<2x32xf32> -> vector<2x32xf32>
    %254 = arith.addf %252, %253 : vector<2x32xf32>
    %255 = vector.extract_strided_slice %254 {offsets = [0, 0], sizes = [2, 8], strides = [1, 1]} : vector<2x32xf32> to vector<2x8xf32>
    %256 = arith.negf %255 : vector<2x8xf32>
    %257 = math.exp %256 : vector<2x8xf32>
    %cst_90 = arith.constant 1.000000e+00 : f32
    %258 = vector.broadcast %cst_90 : f32 to vector<2x8xf32>
    %259 = arith.addf %258, %257 : vector<2x8xf32>
    %260 = arith.divf %258, %259 : vector<2x8xf32>
    %261 = vector.extract_strided_slice %254 {offsets = [0, 8], sizes = [2, 8], strides = [1, 1]} : vector<2x32xf32> to vector<2x8xf32>
    %262 = arith.negf %261 : vector<2x8xf32>
    %263 = math.exp %262 : vector<2x8xf32>
    %cst_91 = arith.constant 1.000000e+00 : f32
    %264 = vector.broadcast %cst_91 : f32 to vector<2x8xf32>
    %265 = arith.addf %264, %263 : vector<2x8xf32>
    %266 = arith.divf %264, %265 : vector<2x8xf32>
    %267 = vector.extract_strided_slice %254 {offsets = [0, 16], sizes = [2, 8], strides = [1, 1]} : vector<2x32xf32> to vector<2x8xf32>
    %268 = math.tanh %267 : vector<2x8xf32>
    %269 = vector.extract_strided_slice %254 {offsets = [0, 24], sizes = [2, 8], strides = [1, 1]} : vector<2x32xf32> to vector<2x8xf32>
    %270 = arith.negf %269 : vector<2x8xf32>
    %271 = math.exp %270 : vector<2x8xf32>
    %cst_92 = arith.constant 1.000000e+00 : f32
    %272 = vector.broadcast %cst_92 : f32 to vector<2x8xf32>
    %273 = arith.addf %272, %271 : vector<2x8xf32>
    %274 = arith.divf %272, %273 : vector<2x8xf32>
    %275 = arith.mulf %266, %239 : vector<2x8xf32>
    %276 = arith.mulf %260, %268 : vector<2x8xf32>
    %277 = arith.addf %275, %276 : vector<2x8xf32>
    %278 = math.tanh %277 : vector<2x8xf32>
    %279 = arith.mulf %274, %278 : vector<2x8xf32>
    %c0_93 = arith.constant 0 : index
    %280 = arith.index_cast %249 : i32 to index
    %c0_94 = arith.constant 0 : index
    %c0_95 = arith.constant 0 : index
    %281 = vector.load %arg6[%c0_93, %280, %c0_94, %c0_95] : memref<1x8x2x8xf32, #tpu.memory_space<vmem>>, vector<1x1x2x8xf32>
    %282 = vector.shape_cast %281 : vector<1x1x2x8xf32> to vector<2x8xf32>
    %283 = vector.shape_cast %279 : vector<2x8xf32> to vector<1x1x2x8xf32>
    tpu.vector_store %arg6[%c0_93, %280, %c0_94, %c0_95], %283 {strides = array<i32>} : memref<1x8x2x8xf32, #tpu.memory_space<vmem>>, vector<1x1x2x8xf32>,
    %c7_i32_96 = arith.constant 7 : i32
    %c2_i32_97 = arith.constant 2 : i32
    %284 = arith.muli %c2_i32_97, %c7_i32_96 : i32
    %c7_i32_98 = arith.constant 7 : i32
    %285 = arith.subi %c7_i32_98, %284 : i32
    %286 = arith.muli %arg0, %285 : i32
    %287 = arith.addi %c7_i32_96, %286 : i32
    %288 = arith.index_cast %287 : i32 to index
    %c0_99 = arith.constant 0 : index
    %c0_100 = arith.constant 0 : index
    %289 = vector.load %arg9[%288, %c0_99, %c0_100] : memref<8x2x32xf32, #tpu.memory_space<vmem>>, vector<1x2x32xf32>
    %290 = vector.shape_cast %289 : vector<1x2x32xf32> to vector<2x32xf32>
    %cst_101 = arith.constant dense<0.000000e+00> : vector<2x32xf32>
    %291 = tpu.matmul %279, %15, %cst_101 {dimension_numbers = #tpu.dot_dimension_numbers<[1], [0], [0], [1], [0, 0, 1, 1], [], []>} : vector<2x8xf32>, vector<8x32xf32>, vector<2x32xf32> -> vector<2x32xf32>
    %292 = arith.addf %290, %291 : vector<2x32xf32>
    %293 = vector.extract_strided_slice %292 {offsets = [0, 0], sizes = [2, 8], strides = [1, 1]} : vector<2x32xf32> to vector<2x8xf32>
    %294 = arith.negf %293 : vector<2x8xf32>
    %295 = math.exp %294 : vector<2x8xf32>
    %cst_102 = arith.constant 1.000000e+00 : f32
    %296 = vector.broadcast %cst_102 : f32 to vector<2x8xf32>
    %297 = arith.addf %296, %295 : vector<2x8xf32>
    %298 = arith.divf %296, %297 : vector<2x8xf32>
    %299 = vector.extract_strided_slice %292 {offsets = [0, 8], sizes = [2, 8], strides = [1, 1]} : vector<2x32xf32> to vector<2x8xf32>
    %300 = arith.negf %299 : vector<2x8xf32>
    %301 = math.exp %300 : vector<2x8xf32>
    %cst_103 = arith.constant 1.000000e+00 : f32
    %302 = vector.broadcast %cst_103 : f32 to vector<2x8xf32>
    %303 = arith.addf %302, %301 : vector<2x8xf32>
    %304 = arith.divf %302, %303 : vector<2x8xf32>
    %305 = vector.extract_strided_slice %292 {offsets = [0, 16], sizes = [2, 8], strides = [1, 1]} : vector<2x32xf32> to vector<2x8xf32>
    %306 = math.tanh %305 : vector<2x8xf32>
    %307 = vector.extract_strided_slice %292 {offsets = [0, 24], sizes = [2, 8], strides = [1, 1]} : vector<2x32xf32> to vector<2x8xf32>
    %308 = arith.negf %307 : vector<2x8xf32>
    %309 = math.exp %308 : vector<2x8xf32>
    %cst_104 = arith.constant 1.000000e+00 : f32
    %310 = vector.broadcast %cst_104 : f32 to vector<2x8xf32>
    %311 = arith.addf %310, %309 : vector<2x8xf32>
    %312 = arith.divf %310, %311 : vector<2x8xf32>
    %313 = arith.mulf %304, %277 : vector<2x8xf32>
    %314 = arith.mulf %298, %306 : vector<2x8xf32>
    %315 = arith.addf %313, %314 : vector<2x8xf32>
    %316 = math.tanh %315 : vector<2x8xf32>
    %317 = arith.mulf %312, %316 : vector<2x8xf32>
    %c0_105 = arith.constant 0 : index
    %318 = arith.index_cast %287 : i32 to index
    %c0_106 = arith.constant 0 : index
    %c0_107 = arith.constant 0 : index
    %319 = vector.load %arg6[%c0_105, %318, %c0_106, %c0_107] : memref<1x8x2x8xf32, #tpu.memory_space<vmem>>, vector<1x1x2x8xf32>
    %320 = vector.shape_cast %319 : vector<1x1x2x8xf32> to vector<2x8xf32>
    %321 = vector.shape_cast %317 : vector<2x8xf32> to vector<1x1x2x8xf32>
    tpu.vector_store %arg6[%c0_105, %318, %c0_106, %c0_107], %321 {strides = array<i32>} : memref<1x8x2x8xf32, #tpu.memory_space<vmem>>, vector<1x1x2x8xf32>,
    %c8_i32 = arith.constant 8 : i32
    %c0_108 = arith.constant 0 : index
    %c0_109 = arith.constant 0 : index
    %322 = vector.load %arg10[%c0_108, %c0_109] : memref<2x8xf32, #tpu.memory_space<vmem>>, vector<2x8xf32>
    tpu.vector_store %arg10[%c0_108, %c0_109], %317 {strides = array<i32>} : memref<2x8xf32, #tpu.memory_space<vmem>>, vector<2x8xf32>,
    %c0_110 = arith.constant 0 : index
    %c0_111 = arith.constant 0 : index
    %323 = vector.load %arg11[%c0_110, %c0_111] : memref<2x8xf32, #tpu.memory_space<vmem>>, vector<2x8xf32>
    tpu.vector_store %arg11[%c0_110, %c0_111], %315 {strides = array<i32>} : memref<2x8xf32, #tpu.memory_space<vmem>>, vector<2x8xf32>,
    %c0_i32_112 = arith.constant 0 : i32
    %324 = arith.cmpi eq, %arg1, %c0_i32_112 : i32
    %325 = arith.extui %324 : i1 to i32
    %c0_i32_113 = arith.constant 0 : i32
    %326 = arith.cmpi ne, %325, %c0_i32_113 : i32
    scf.if %326 {
      %c0_114 = arith.constant 0 : index
      %c0_115 = arith.constant 0 : index
      %c0_116 = arith.constant 0 : index
      %327 = vector.load %arg7[%c0_114, %c0_115, %c0_116] : memref<1x2x8xf32, #tpu.memory_space<vmem>>, vector<1x2x8xf32>
      %328 = vector.shape_cast %327 : vector<1x2x8xf32> to vector<2x8xf32>
      %329 = vector.shape_cast %317 : vector<2x8xf32> to vector<1x2x8xf32>
      tpu.vector_store %arg7[%c0_114, %c0_115, %c0_116], %329 {strides = array<i32>} : memref<1x2x8xf32, #tpu.memory_space<vmem>>, vector<1x2x8xf32>,
      %c0_117 = arith.constant 0 : index
      %c0_118 = arith.constant 0 : index
      %c0_119 = arith.constant 0 : index
      %330 = vector.load %arg8[%c0_117, %c0_118, %c0_119] : memref<1x2x8xf32, #tpu.memory_space<vmem>>, vector<1x2x8xf32>
      %331 = vector.shape_cast %330 : vector<1x2x8xf32> to vector<2x8xf32>
      %332 = vector.shape_cast %315 : vector<2x8xf32> to vector<1x2x8xf32>
      tpu.vector_store %arg8[%c0_117, %c0_118, %c0_119], %332 {strides = array<i32>} : memref<1x2x8xf32, #tpu.memory_space<vmem>>, vector<1x2x8xf32>,
    } else {
    }
    return
  }
  func.func @transform_0(%arg0: i32, %arg1: i32) -> (i32, i32, i32) {
    %c2_i32 = arith.constant 2 : i32
    %0 = arith.muli %c2_i32, %arg1 : i32
    %c0_i32 = arith.constant 0 : i32
    %1 = arith.subi %c0_i32, %0 : i32
    %2 = arith.muli %arg0, %1 : i32
    %3 = arith.addi %arg1, %2 : i32
    %c0_i32_0 = arith.constant 0 : i32
    %c0_i32_1 = arith.constant 0 : i32
    %c0_i32_2 = arith.constant 0 : i32
    return %3, %c0_i32_0, %c0_i32_1 : i32, i32, i32
  }
  func.func @transform_1(%arg0: i32, %arg1: i32) -> (i32, i32, i32) {
    %c0_i32 = arith.constant 0 : i32
    %c0_i32_0 = arith.constant 0 : i32
    %c0_i32_1 = arith.constant 0 : i32
    return %arg0, %c0_i32, %c0_i32_0 : i32, i32, i32
  }
  func.func @transform_2(%arg0: i32, %arg1: i32) -> (i32, i32, i32) {
    %c0_i32 = arith.constant 0 : i32
    %c0_i32_0 = arith.constant 0 : i32
    %c0_i32_1 = arith.constant 0 : i32
    return %arg0, %c0_i32, %c0_i32_0 : i32, i32, i32
  }
  func.func @transform_3(%arg0: i32, %arg1: i32) -> (i32, i32, i32) {
    %c0_i32 = arith.constant 0 : i32
    %c0_i32_0 = arith.constant 0 : i32
    %c0_i32_1 = arith.constant 0 : i32
    return %arg0, %c0_i32, %c0_i32_0 : i32, i32, i32
  }
  func.func @transform_4(%arg0: i32, %arg1: i32) -> (i32, i32, i32, i32) {
    %c2_i32 = arith.constant 2 : i32
    %0 = arith.muli %c2_i32, %arg1 : i32
    %c0_i32 = arith.constant 0 : i32
    %1 = arith.subi %c0_i32, %0 : i32
    %2 = arith.muli %arg0, %1 : i32
    %3 = arith.addi %arg1, %2 : i32
    %c0_i32_0 = arith.constant 0 : i32
    %c0_i32_1 = arith.constant 0 : i32
    %c0_i32_2 = arith.constant 0 : i32
    return %arg0, %3, %c0_i32_0, %c0_i32_1 : i32, i32, i32, i32
  }
  func.func @transform_5(%arg0: i32, %arg1: i32) -> (i32, i32, i32) {
    %c0_i32 = arith.constant 0 : i32
    %c0_i32_0 = arith.constant 0 : i32
    %c0_i32_1 = arith.constant 0 : i32
    return %arg0, %c0_i32, %c0_i32_0 : i32, i32, i32
  }
  func.func @transform_6(%arg0: i32, %arg1: i32) -> (i32, i32, i32) {
    %c0_i32 = arith.constant 0 : i32
    %c0_i32_0 = arith.constant 0 : i32
    %c0_i32_1 = arith.constant 0 : i32
    return %arg0, %c0_i32, %c0_i32_0 : i32, i32, i32
  }
}

</mosaic_0001>

<bundles_post_ra>
// kernel: pblstm_forward.1
= control target key start
LH: loop header
LB: loop body
LE: loop exit
PB: predicated region body
PF: predicated region fallthrough
CT: control target
= control target key end

     0   :  { %12 = vsyncpa [#allocation6], 0  ;;  %s2508_s0 = inlined_call_operand.vmem [shape: f32[8,2,16], index: 0, kind: input, shape index: {}]   ;;  %s2509_s1 = inlined_call_operand.vmem [shape: f32[2,16,32], index: 1, kind: input, shape index: {}]   ;;  %s2510_s2 = inlined_call_operand.vmem [shape: f32[2,8,32], index: 2, kind: input, shape index: {}]   ;;  %s2511_s3 = inlined_call_operand.vmem [shape: f32[2,1,32], index: 3, kind: input, shape index: {}]   ;;  %s2512_s4 = inlined_call_operand.vmem [shape: f32[2,8,2,8], index: 4, kind: output, shape index: {0}]   ;;  %s2513_s5 = inlined_call_operand.hbm [shape: f32[2,2,8], index: 5, kind: output, shape index: {1}]   ;;  %s2514_s6 = inlined_call_operand.hbm [shape: f32[2,2,8], index: 6, kind: output, shape index: {2}]  }
   0x1   :  { %14 = vsyncpa [#allocation6 + $0x1], 0 }
   0x2   :  { %15 = vsyncpa [#allocation8], 0 }
   0x3   :  { %17 = vsyncpa [#allocation8 + $0x1], 0  ;;  %s2184_s21 = smov 0   ;;  %s2186_s22 = smov 0  }
   0x4   :  { %s2188_s23 = smov 0   ;;  %s2190_s24 = smov 0  }
   0x5   :  { %s2192_s25 = smov 0   ;;  %s2194_s26 = smov 0  }
   0x6 LB: > { %s1758_s27 = sadd.s32 4294967295, %s2137_s26   ;;  %s1759_s28 = sadd.s32 4294967294, %s2137_s26   ;;  %s2137_s26 = sphi %s2194_s26, %s23_s26   ;;  %s2133_s25 = sphi %s2192_s25, %s2525_s25   ;;  %s2129_s24 = sphi %s2190_s24, %s2524_s24   ;;  %s2125_s23 = sphi %s2188_s23, %s2523_s23   ;;  %s2121_s22 = sphi %s2186_s22, %s2522_s22   ;;  %s2117_s21 = sphi %s2184_s21, %s2521_s21  }
   0x7   : > { %s35_s29 = sadd.s32 1, %s2133_s25  ;;  %s190_s30 = sadd.s32 1, %s2125_s23 }
   0x8   : > { %p37_p0 = scmp.ge.s32.totalorder %s35_s29, 2  ;;  %p200_p1 = scmp.ne.s32.totalorder %s2125_s23, %s2121_s22 }
   0x9   : > { %p201_p2 = scmp.eq.s32.totalorder %s1758_s27, 1  ;;  %p206_p3 = scmp.ne.s32.totalorder %s2121_s22, %s2117_s21 }
   0xa   : > { %s2527_s29 = smov (%p37_p0, %s35_s29), 0  ;;  %p207_p5 = scmp.eq.s32.totalorder %s1759_s28, 1 }
   0xb   : > { %p2224_p4 = por %p201_p2, %p200_p1  ;;  %s187_s8 = ssub.s32 %s2133_s25, %s2527_s29 }
   0xc   : > { %p1763_p6 = scmp.ge.s32.totalorder %s2137_s26, 1  ;;  %p188_p7 = scmp.eq.s32.totalorder %s187_s8, 0 }
   0xd   : > { %p2231_p8 = por %p207_p5, %p206_p3  ;;  %p289_p9 = scmp.lt.s32.totalorder %s2137_s26, 3 }
   0xe   : > { %s2237_s10 = scalar_select %p188_p7, %s2125_s23, %s190_s30  }
   0xf   : > { %p290_p10 = pnand %p1763_p6, %p289_p9 }
  0x10   : > { %p367_p11 = scmp.lt.s32.totalorder (!%p290_p10), %s2129_s24, 1  ;;  %v404_v0 = vld [vmem:[%s2508_s0] sm:$0x3] (!%p290_p10)  ;;  %v434_v1 = vlaneseq (!%p290_p10)  ;;  %v405_v2 = vld [vmem:[%s2508_s0 + $0x2] sm:$0x3] (!%p290_p10)  ;;  %v2140_v15 = vmov (!%p290_p10), 0.0  }
  0x11   : > { %293 = sbr.rel (%p290_p10) target bundleno = 5683 (0x1633), region = 36  ;;  %v406_v3 = vld [vmem:[%s2508_s0 + $0x4] sm:$0x3] (!%p290_p10)  ;;  %v407_v4 = vld [vmem:[%s2508_s0 + $0x6] sm:$0x3] (!%p290_p10)  ;;  %v429_v10 = vcombine.low (!%p290_p10), %v404_v0, %v405_v2  ;;  %1851 = vmatprep.subr.mxu1 (!%p290_p10), %v2140_v15  ;;  %vm401_vm0 = vcmask (!%p290_p10), 58368  }
  0x12   : > { %v2139_v5 = vmov (!%p290_p10), 1983009808   ;;  %v435_v7 = vshrl.u32 (!%p290_p10), %v434_v1, 7  ;;  %v408_v8 = vld [vmem:[%s2508_s0 + $0x8] sm:$0x3] (!%p290_p10)  ;;  %v430_v11 = vcombine.low (!%p290_p10), %v406_v3, %v407_v4  ;;  %vm2141_vm1 = vmmov (!%p290_p10), 0  }
  0x13   : > { %v432_v6 = vunpack.c.l.s4 (!%p290_p10), %v2139_v5  ;;  %v409_v9 = vld [vmem:[%s2508_s0 + $0xa] sm:$0x3] (!%p290_p10)  ;;  %v410_v12 = vld [vmem:[%s2508_s0 + $0xc] sm:$0x3] (!%p290_p10)  ;;  %v411_v13 = vld [vmem:[%s2508_s0 + $0xe] sm:$0x3] (!%p290_p10)  ;;  %1853 = vmatprep.mubr.msk.f32.mxu1 (!%p290_p10), %vm2141_vm1, %v2140_v15 }
  0x14   : > { %v446_v14 = vcombine.low (!%p290_p10), %v408_v8, %v409_v9  ;;  %v447_v17 = vcombine.low (!%p290_p10), %v410_v12, %v411_v13  ;;  %402 = vst.msk [vmem:[#allocation3] sm:$0x3] (!%p290_p10), %vm401_vm0, %v2140_v15  ;;  %403 = vst.msk [vmem:[#allocation4] sm:$0x3] (!%p290_p10), %vm401_vm0, %v2140_v15  ;;  %vm463_vm2 = vcmask (!%p290_p10), 130048   ;;  %vm603_vm3 = vcmask (!%p290_p10), 64512  }
  0x15   : > { %v433_v16 = vunpack.c.0.s8 (!%p290_p10), %v432_v6  ;;  %vm587_vm4 = vcmask (!%p290_p10), 254976   ;;  %s1774_s13 = smul.u32 (!%p290_p10), 14, %s2129_s24  ;;  %s2142_s15 = smov (!%p290_p10), 112  }
  0x16   : > { %s2143_s16 = smov (!%p290_p10), 8   ;;  %s2144_s17 = smov (!%p290_p10), 16  }
  0x17   : > { %v436_v22 = vsub.s32 (!%p290_p10), %v433_v16, %v435_v7  ;;  %s601_s14 = scalar_lea.vmem (!%p290_p10), [#allocation2], %s1774_s13  ;;  %s1789_s20 = sshll.u32 (!%p290_p10), %s2129_s24, 1 }
  0x18   : > { %s2253_s19 = scalar_select %p367_p11, %s2129_s24, 1 }
  0x19   : > { %v437_v23 = vrot.slane %v429_v10, %v436_v22  ;;  %v444_v24 = vrot.slane %v430_v11, %v436_v22  ;;  %v454_v25 = vrot.slane %v446_v14, %v436_v22  ;;  %v461_v26 = vrot.slane %v447_v17, %v436_v22  ;;  %s1636_s27 = scalar_lea.vmem [#allocation2], %s1789_s20 }
  0x1a   : > { %s1822_s8 = sshll.u32 %s2253_s19, 4  ;;  %s1768_s11 = sshll.u32 %s2253_s19, 3 }
  0x1b   : > { %s371_s18 = scalar_lea.vmem %s2509_s1, %s1822_s8  ;;  %s375_s28 = scalar_lea.vmem %s2510_s2, %s1768_s11  ;;  %v445_v27 = vcombine.low %v437_v23, %v444_v24  ;;  %v462_v28 = vcombine.low %v454_v25, %v461_v26  ;;  %v597_v29 = vld [vmem:[#allocation3] sm:$0x3]  ;;  %v598_v50 = vld [vmem:[#allocation4] sm:$0x3] }
  0x1c   : > { %v412_v18 = vld [vmem:[%s371_s18] sm:$0xff]  ;;  %v413_v19 = vld [vmem:[%s371_s18 + $0x8] sm:$0xff]  ;;  %s378_s12 = scalar_lea.vmem %s2511_s3, %s2253_s19  ;;  %s2145_s18 = smov 104  }
  0x1d   : > { %v2278_v20 = vld [vmem:[%s375_s28] sm:$0xff]  ;;  %v1891_v21 = vpack.c.bf16 %v413_v19, %v412_v18  ;;  %1848 = vmatprep.mubr.msk.f32.mxu0 %vm463_vm2, %v445_v27  ;;  %s2323_s28 = scalar_lea.vmem %s2512_s4, %s1822_s8  ;;  %s1777_s19 = smul.u32 10, %s2129_s24 }
  0x1e   : > { %1852 = vmatpush3.msra.mxu1 %v2278_v20  ;;  %v1771_v30 = vld [vmem:[%s378_s12] ss:$0 sm:$0xff]  ;;  %s710_s30 = scalar_lea.vmem %s2323_s28, %s1774_s13  ;;  %s1783_s12 = smul.u32 6, %s2129_s24 }
  0x1f   : > { %1856 = vmatprep.subr.mxu1 %v2140_v15  ;;  %1892 = vmatprep.subr.bf16.mxu0 %v1891_v21  ;;  %s1621_s11 = scalar_lea.vmem [#allocation2], %s1777_s19  ;;  %s1625_s8 = scalar_lea.vmem %s2323_s28, %s1777_s19 }
  0x20   : > { %1894 = vmatpush3.bf16.msra.mxu0 %v1891_v21  ;;  %1854 = vmatmul.mubr.msk.f32.vlgmr.msra.gmra.mrb[0].mxu1 %vm603_vm3, %v597_v29  ;;  %s1629_s13 = scalar_lea.vmem [#allocation2], %s1783_s12  ;;  %s1036_s19 = ssub.s32 4, %s2129_s24 }
  0x21   : > { %1861 = vmatprep.subr.mxu0 %v2140_v15  ;;  %1857 = vmatpush3.msra.mxu1 %v2278_v20 }
  0x22   : > { %1858 = vmatprep.mubr.msk.f32.mxu1 %vm2141_vm1, %v2140_v15  ;;  %1866 = vmatprep.subr.mxu1 %v2140_v15 }
  0x23   : > { %1849 = vmatmul.mubr.msk.f32.vlgmr.msra.gmra.mrb[0].mxu0 %vm463_vm2, %v462_v28 }
  0x24   : > { %1862 = vmatpush3.msra.mxu0 %v2278_v20  ;;  %1863 = vmatprep.mubr.msk.f32.mxu0 %vm2141_vm1, %v2140_v15 }
  0x25   : > { %1871 = vmatprep.subr.mxu0 %v2140_v15 }
  0xf3   : > { %v673_v32 = vpop.f32.mrb[0].mxu1 }
  0xf4   : > { %v1855_v35 = vpop.f32.mrb[1].mxu1 }
  0xf6   : > { %v1850_v31 = vpop.f32.mrb[0].mxu0 }
  0xf7   : > { %v540_v33 = vadd.f32 %v1850_v31, %v1771_v30  ;;  %v534_v34 = vpop.f32.mrb[1].mxu0 }
  0xf8   : > { %v535_v36 = vadd.f32 %v1771_v30, %v534_v34 }
  0xf9   : > { %v562_v37 = vcombine.high %v540_v33, %v540_v33  ;;  %v569_v38 = vrot.slane %v540_v33, %v436_v22 }
  0xfa   : > { %v545_v39 = vcombine.high %v535_v36, %v535_v36  ;;  %v552_v40 = vrot.slane %v535_v36, %v436_v22 }
  0xfb   : > { %v576_v41 = vrot.slane %v562_v37, %v436_v22  ;;  %v577_v42 = vcombine.high %v569_v38, %v569_v38  ;;  %592 = vst.msk [vmem:[#allocation2 + $0x8] sm:$0x3] %vm587_vm4, %v569_v38 }
  0xfc   : > { %v559_v43 = vrot.slane %v545_v39, %v436_v22  ;;  %v560_v44 = vcombine.high %v552_v40, %v552_v40  ;;  %588 = vst.msk [vmem:[#allocation2] sm:$0x3] %vm587_vm4, %v552_v40 }
  0xfd   : > { %v578_v45 = vcombine.high %v576_v41, %v576_v41  ;;  %593 = vst.msk [vmem:[#allocation2 + $0xa] sm:$0x3] %vm587_vm4, %v577_v42  ;;  %594 = vst.msk [vmem:[#allocation2 + $0xc] sm:$0x3] %vm587_vm4, %v576_v41 }
  0xfe   : > { %v561_v46 = vcombine.high %v559_v43, %v559_v43  ;;  %589 = vst.msk [vmem:[#allocation2 + $0x2] sm:$0x3] %vm587_vm4, %v560_v44  ;;  %590 = vst.msk [vmem:[#allocation2 + $0x4] sm:$0x3] %vm587_vm4, %v559_v43 }
  0xff   : > { %595 = vst.msk [vmem:[#allocation2 + $0xe] sm:$0x3] %vm587_vm4, %v578_v45 }
 0x100   : > { %591 = vst.msk [vmem:[#allocation2 + $0x6] sm:$0x3] %vm587_vm4, %v561_v46 }
 0x107   : > { %v602_v47 = vld [vmem:[%s601_s14] sm:$0x3]  ;;  %v1778_v1 = vld [vmem:[%s1621_s11 + $0x2] sm:$0x3]  ;;  %v1784_v21 = vld [vmem:[%s1629_s13 + $0x4] sm:$0x3]  ;;  %s1633_s14 = scalar_lea.vmem %s2323_s28, %s1783_s12 }
 0x108   : > { %v677_v48 = vadd.f32 %v673_v32, %v602_v47  ;;  %v1790_v39 = vld [vmem:[%s1636_s27 + $0x6] sm:$0x3]  ;;  %s2370_s11 = sshll.u32 %s1036_s19, 1  ;;  %s1798_s13 = smul.u32 4294967290, %s2129_s24 }
 0x109   : > { %s1141_s12 = scalar_lea.vmem %s2323_s28, %s2370_s11  ;;  %s1804_s27 = smul.u32 4294967286, %s2129_s24 }
 0x10a   : > { %1963 = vtanh.f32 %v677_v48  ;;  %v1776_v51 = vmul.f32 -1.442695, %v677_v48 }
 0x10b   : > { %s1659_s19 = scalar_lea.vmem %s2323_s28, %s1804_s27 }
 0x10c   : > { %1965 = vpow2.f32 %v1776_v51 }
 0x114   : > { %v1964_v49 = vpop.eup %1963 }
 0x115   : > { %691 = vrot.lane.b32.xlu0 %v1964_v49, %s2142_s15 }
 0x116   : > { %v1966_v52 = vpop.eup %1965 }
 0x117   : > { %v681_v53 = vadd.f32 1.0, %v1966_v52 }
 0x119   : > { %686 = vrot.lane.b32.xlu0 %v598_v50, %s2143_s16  ;;  %1967 = vrcp.f32 %v681_v53 }
 0x123   : > { %v1968_v54 = vpop.eup %1967 }
 0x187   : > { %v692_v55 = vpop.permute.xlu0 %691 }
 0x188   : > { %v694_v56 = vmul.f32 %v1968_v54, %v692_v55 }
 0x18a   : > { %696 = vrot.lane.b32.xlu1 %v694_v56, %s2143_s16 }
 0x18b   : > { %v687_v57 = vpop.permute.xlu0 %686 }
 0x18c   : > { %v689_v58 = vmul.f32 %v1968_v54, %v687_v57 }
 0x1fc   : > { %v697_v59 = vpop.permute.xlu1 %696 }
 0x1fd   : > { %v699_v60 = vadd.f32 %v697_v59, %v689_v58 }
 0x1ff   : > { %1969 = vtanh.f32 %v699_v60 }
 0x209   : > { %v1970_v61 = vpop.eup %1969 }
 0x20a   : > { %702 = vrot.lane.b32.xlu1 %v1970_v61, %s2144_s17 }
 0x27c   : > { %v703_v62 = vpop.permute.xlu1 %702 }
 0x27d   : > { %v705_v63 = vmul.f32 %v1968_v54, %v703_v62 }
 0x27f   : > { %707 = vrot.lane.b32.xlu0 %v705_v63, %s2145_s18 }
 0x2f1   : > { %v708_v0 = vpop.permute.xlu0 %707 }
 0x2f2   : > { %712 = vst.msk [vmem:[%s710_s30] sm:$0x3] %vm401_vm0, %v708_v0  ;;  %1859 = vmatmul.mubr.msk.f32.vlgmr.msra.gmra.mrb[2].mxu1 %vm603_vm3, %v708_v0  ;;  %s1639_s30 = scalar_lea.vmem %s2323_s28, %s1789_s20  ;;  %s1651_s20 = scalar_lea.vmem %s2323_s28, %s1798_s13 }
 0x2f3   : > { %1867 = vmatpush3.msra.mxu1 %v2278_v20  ;;  %1868 = vmatprep.mubr.msk.f32.mxu1 %vm2141_vm1, %v2140_v15 }
 0x2f4   : > { %1876 = vmatprep.subr.mxu1 %v2140_v15 }
 0x3c5   : > { %v786_v2 = vpop.f32.mrb[2].mxu1 }
 0x3c6   : > { %v790_v3 = vadd.f32 %v1778_v1, %v786_v2  ;;  %v1860_v4 = vpop.f32.mrb[3].mxu1 }
 0x3c8   : > { %1971 = vtanh.f32 %v790_v3  ;;  %v1780_v6 = vmul.f32 -1.442695, %v790_v3 }
 0x3ca   : > { %1973 = vpow2.f32 %v1780_v6 }
 0x3d2   : > { %v1972_v5 = vpop.eup %1971 }
 0x3d3   : > { %800 = vrot.lane.b32.xlu1 %v1972_v5, %s2142_s15 }
 0x3d4   : > { %v1974_v7 = vpop.eup %1973 }
 0x3d5   : > { %v794_v8 = vadd.f32 1.0, %v1974_v7 }
 0x3d7   : > { %1975 = vrcp.f32 %v794_v8 }
 0x3e1   : > { %v1976_v9 = vpop.eup %1975 }
 0x3e2   : > { %v798_v12 = vmul.f32 %v1976_v9, %v699_v60 }
 0x445   : > { %v801_v10 = vpop.permute.xlu1 %800 }
 0x446   : > { %v803_v11 = vmul.f32 %v1976_v9, %v801_v10 }
 0x448   : > { %805 = vrot.lane.b32.xlu0 %v803_v11, %s2143_s16 }
 0x4ba   : > { %v806_v13 = vpop.permute.xlu0 %805 }
 0x4bb   : > { %v808_v14 = vadd.f32 %v806_v13, %v798_v12 }
 0x4bd   : > { %1977 = vtanh.f32 %v808_v14 }
 0x4c7   : > { %v1978_v16 = vpop.eup %1977 }
 0x4c8   : > { %811 = vrot.lane.b32.xlu1 %v1978_v16, %s2144_s17 }
 0x53a   : > { %v812_v17 = vpop.permute.xlu1 %811 }
 0x53b   : > { %v814_v18 = vmul.f32 %v1976_v9, %v812_v17 }
 0x53d   : > { %816 = vrot.lane.b32.xlu0 %v814_v18, %s2145_s18 }
 0x5af   : > { %v817_v19 = vpop.permute.xlu0 %816 }
 0x5b0   : > { %1782 = vst.msk [vmem:[%s1625_s8 + $0x2] sm:$0x3] %vm401_vm0, %v817_v19  ;;  %1864 = vmatmul.mubr.msk.f32.vlgmr.msra.gmra.mrb[2].mxu0 %vm603_vm3, %v817_v19  ;;  %s1038_s8 = scalar_lea.vmem [#allocation2], %s2370_s11  ;;  %s2516_s11 = smul.u32 4294967282, %s2129_s24 }
 0x5b1   : > { %1872 = vmatpush3.msra.mxu0 %v2278_v20  ;;  %1873 = vmatprep.mubr.msk.f32.mxu0 %vm2141_vm1, %v2140_v15  ;;  %v1039_v57 = vld [vmem:[%s1038_s8] sm:$0x3] }
 0x5b2   : > { %1881 = vmatprep.subr.mxu0 %v2140_v15  ;;  %s1663_s8 = scalar_lea.vmem [#allocation2], %s2516_s11 }
 0x683   : > { %v894_v22 = vpop.f32.mrb[2].mxu0 }
 0x684   : > { %v898_v23 = vadd.f32 %v1784_v21, %v894_v22  ;;  %v1865_v24 = vpop.f32.mrb[3].mxu0 }
 0x686   : > { %1979 = vtanh.f32 %v898_v23  ;;  %v1786_v26 = vmul.f32 -1.442695, %v898_v23 }
 0x688   : > { %1981 = vpow2.f32 %v1786_v26 }
 0x690   : > { %v1980_v25 = vpop.eup %1979 }
 0x691   : > { %908 = vrot.lane.b32.xlu1 %v1980_v25, %s2142_s15 }
 0x692   : > { %v1982_v27 = vpop.eup %1981 }
 0x693   : > { %v902_v28 = vadd.f32 1.0, %v1982_v27 }
 0x695   : > { %1983 = vrcp.f32 %v902_v28 }
 0x69f   : > { %v1984_v29 = vpop.eup %1983 }
 0x6a0   : > { %v906_v32 = vmul.f32 %v1984_v29, %v808_v14 }
 0x703   : > { %v909_v30 = vpop.permute.xlu1 %908 }
 0x704   : > { %v911_v31 = vmul.f32 %v1984_v29, %v909_v30 }
 0x706   : > { %913 = vrot.lane.b32.xlu0 %v911_v31, %s2143_s16 }
 0x778   : > { %v914_v33 = vpop.permute.xlu0 %913 }
 0x779   : > { %v916_v34 = vadd.f32 %v914_v33, %v906_v32 }
 0x77b   : > { %1985 = vtanh.f32 %v916_v34 }
 0x785   : > { %v1986_v35 = vpop.eup %1985 }
 0x786   : > { %919 = vrot.lane.b32.xlu1 %v1986_v35, %s2144_s17 }
 0x7f8   : > { %v920_v36 = vpop.permute.xlu1 %919 }
 0x7f9   : > { %v922_v37 = vmul.f32 %v1984_v29, %v920_v36 }
 0x7fb   : > { %924 = vrot.lane.b32.xlu0 %v922_v37, %s2145_s18 }
 0x86d   : > { %v925_v38 = vpop.permute.xlu0 %924 }
 0x86e   : > { %1788 = vst.msk [vmem:[%s1633_s14 + $0x4] sm:$0x3] %vm401_vm0, %v925_v38  ;;  %1869 = vmatmul.mubr.msk.f32.vlgmr.msra.gmra.mrb[4].mxu1 %vm603_vm3, %v925_v38  ;;  %s1647_s14 = scalar_lea.vmem [#allocation2], %s1798_s13 }
 0x86f   : > { %1877 = vmatpush3.msra.mxu1 %v2278_v20  ;;  %1878 = vmatprep.mubr.msk.f32.mxu1 %vm2141_vm1, %v2140_v15  ;;  %v1799_v11 = vld [vmem:[%s1647_s14 + $0xa] sm:$0x3]  ;;  %s2515_s14 = sshll.u32 %s2129_s24, 5 }
 0x870   : > { %1886 = vmatprep.subr.mxu1 %v2140_v15 }
 0x941   : > { %v1001_v40 = vpop.f32.mrb[4].mxu1 }
 0x942   : > { %v1005_v41 = vadd.f32 %v1790_v39, %v1001_v40  ;;  %v1870_v42 = vpop.f32.mrb[5].mxu1 }
 0x944   : > { %1987 = vtanh.f32 %v1005_v41  ;;  %v1792_v44 = vmul.f32 -1.442695, %v1005_v41 }
 0x946   : > { %1989 = vpow2.f32 %v1792_v44 }
 0x94e   : > { %v1988_v43 = vpop.eup %1987 }
 0x94f   : > { %1015 = vrot.lane.b32.xlu1 %v1988_v43, %s2142_s15 }
 0x950   : > { %v1990_v45 = vpop.eup %1989 }
 0x951   : > { %v1009_v46 = vadd.f32 1.0, %v1990_v45 }
 0x953   : > { %1991 = vrcp.f32 %v1009_v46 }
 0x95d   : > { %v1992_v47 = vpop.eup %1991 }
 0x95e   : > { %v1013_v50 = vmul.f32 %v1992_v47, %v916_v34 }
 0x9c1   : > { %v1016_v48 = vpop.permute.xlu1 %1015 }
 0x9c2   : > { %v1018_v49 = vmul.f32 %v1992_v47, %v1016_v48 }
 0x9c4   : > { %1020 = vrot.lane.b32.xlu0 %v1018_v49, %s2143_s16 }
 0xa36   : > { %v1021_v51 = vpop.permute.xlu0 %1020 }
 0xa37   : > { %v1023_v52 = vadd.f32 %v1021_v51, %v1013_v50 }
 0xa39   : > { %1993 = vtanh.f32 %v1023_v52 }
 0xa43   : > { %v1994_v53 = vpop.eup %1993 }
 0xa44   : > { %1026 = vrot.lane.b32.xlu1 %v1994_v53, %s2144_s17 }
 0xab6   : > { %v1027_v54 = vpop.permute.xlu1 %1026 }
 0xab7   : > { %v1029_v55 = vmul.f32 %v1992_v47, %v1027_v54  ;;  %v1811_v47 = vld [vmem:[%s1663_s8 + $0xe] sm:$0x3] }
 0xab9   : > { %1031 = vrot.lane.b32.xlu0 %v1029_v55, %s2145_s18 }
 0xb2b   : > { %v1032_v56 = vpop.permute.xlu0 %1031 }
 0xb2c   : > { %1794 = vst.msk [vmem:[%s1639_s30 + $0x6] sm:$0x3] %vm401_vm0, %v1032_v56  ;;  %1874 = vmatmul.mubr.msk.f32.vlgmr.msra.gmra.mrb[4].mxu0 %vm603_vm3, %v1032_v56  ;;  %s1655_s30 = scalar_lea.vmem [#allocation2], %s1804_s27 }
 0xb2d   : > { %1882 = vmatpush3.msra.mxu0 %v2278_v20  ;;  %1883 = vmatprep.mubr.msk.f32.mxu0 %vm2141_vm1, %v2140_v15  ;;  %v1805_v29 = vld [vmem:[%s1655_s30 + $0xc] sm:$0x3]  ;;  %s2419_s30 = scalar_lea.hbm %s2514_s6, %s2515_s14 }
 0xbff   : > { %v1108_v58 = vpop.f32.mrb[4].mxu0 }
 0xc00   : > { %v1112_v59 = vadd.f32 %v1108_v58, %v1039_v57  ;;  %v1875_v60 = vpop.f32.mrb[5].mxu0 }
 0xc02   : > { %1995 = vtanh.f32 %v1112_v59  ;;  %v1797_v62 = vmul.f32 -1.442695, %v1112_v59 }
 0xc04   : > { %1997 = vpow2.f32 %v1797_v62 }
 0xc0c   : > { %v1996_v61 = vpop.eup %1995 }
 0xc0d   : > { %1122 = vrot.lane.b32.xlu1 %v1996_v61, %s2142_s15 }
 0xc0e   : > { %v1998_v63 = vpop.eup %1997 }
 0xc0f   : > { %v1116_v0 = vadd.f32 1.0, %v1998_v63 }
 0xc11   : > { %1999 = vrcp.f32 %v1116_v0 }
 0xc1b   : > { %v2000_v1 = vpop.eup %1999 }
 0xc1c   : > { %v1120_v4 = vmul.f32 %v2000_v1, %v1023_v52 }
 0xc7f   : > { %v1123_v2 = vpop.permute.xlu1 %1122 }
 0xc80   : > { %v1125_v3 = vmul.f32 %v2000_v1, %v1123_v2 }
 0xc82   : > { %1127 = vrot.lane.b32.xlu0 %v1125_v3, %s2143_s16 }
 0xcf4   : > { %v1128_v5 = vpop.permute.xlu0 %1127 }
 0xcf5   : > { %v1130_v6 = vadd.f32 %v1128_v5, %v1120_v4 }
 0xcf7   : > { %2001 = vtanh.f32 %v1130_v6 }
 0xd01   : > { %v2002_v7 = vpop.eup %2001 }
 0xd02   : > { %1133 = vrot.lane.b32.xlu1 %v2002_v7, %s2144_s17 }
 0xd74   : > { %v1134_v8 = vpop.permute.xlu1 %1133 }
 0xd75   : > { %v1136_v9 = vmul.f32 %v2000_v1, %v1134_v8 }
 0xd77   : > { %1138 = vrot.lane.b32.xlu0 %v1136_v9, %s2145_s18 }
 0xde9   : > { %v1139_v10 = vpop.permute.xlu0 %1138 }
 0xdea   : > { %1142 = vst.msk [vmem:[%s1141_s12] sm:$0x3] %vm401_vm0, %v1139_v10  ;;  %1879 = vmatmul.mubr.msk.f32.vlgmr.msra.gmra.mrb[6].mxu1 %vm603_vm3, %v1139_v10  ;;  %s2407_s12 = sand.u32 1, %s2121_s22  }
 0xdeb   : > { %1887 = vmatpush3.msra.mxu1 %v2278_v20  ;;  %1888 = vmatprep.mubr.msk.f32.mxu1 %vm2141_vm1, %v2140_v15  ;;  %s1764_s13 = sshll.u32 %s2407_s12, 1 }
 0xebd   : > { %v1216_v12 = vpop.f32.mrb[6].mxu1 }
 0xebe   : > { %v1220_v13 = vadd.f32 %v1799_v11, %v1216_v12  ;;  %v1880_v14 = vpop.f32.mrb[7].mxu1 }
 0xec0   : > { %2003 = vtanh.f32 %v1220_v13  ;;  %v1801_v17 = vmul.f32 -1.442695, %v1220_v13 }
 0xec2   : > { %2005 = vpow2.f32 %v1801_v17 }
 0xeca   : > { %v2004_v16 = vpop.eup %2003 }
 0xecb   : > { %1230 = vrot.lane.b32.xlu1 %v2004_v16, %s2142_s15 }
 0xecc   : > { %v2006_v18 = vpop.eup %2005 }
 0xecd   : > { %v1224_v19 = vadd.f32 1.0, %v2006_v18 }
 0xecf   : > { %2007 = vrcp.f32 %v1224_v19 }
 0xed9   : > { %v2008_v20 = vpop.eup %2007 }
 0xeda   : > { %v1228_v22 = vmul.f32 %v2008_v20, %v1130_v6 }
 0xf3d   : > { %v1231_v21 = vpop.permute.xlu1 %1230 }
 0xf3e   : > { %v1233_v15 = vmul.f32 %v2008_v20, %v1231_v21 }
 0xf40   : > { %1235 = vrot.lane.b32.xlu0 %v1233_v15, %s2143_s16 }
 0xfb2   : > { %v1236_v23 = vpop.permute.xlu0 %1235 }
 0xfb3   : > { %v1238_v24 = vadd.f32 %v1236_v23, %v1228_v22 }
 0xfb5   : > { %2009 = vtanh.f32 %v1238_v24 }
 0xfbf   : > { %v2010_v25 = vpop.eup %2009 }
 0xfc0   : > { %1241 = vrot.lane.b32.xlu1 %v2010_v25, %s2144_s17 }
0x1032   : > { %v1242_v26 = vpop.permute.xlu1 %1241 }
0x1033   : > { %v1244_v27 = vmul.f32 %v2008_v20, %v1242_v26 }
0x1035   : > { %1246 = vrot.lane.b32.xlu0 %v1244_v27, %s2145_s18 }
0x10a7   : > { %v1247_v28 = vpop.permute.xlu0 %1246 }
0x10a8   : > { %1803 = vst.msk [vmem:[%s1651_s20 + $0xa] sm:$0x3] %vm401_vm0, %v1247_v28  ;;  %1884 = vmatmul.mubr.msk.f32.vlgmr.msra.gmra.mrb[6].mxu0 %vm603_vm3, %v1247_v28 }
0x117b   : > { %v1324_v30 = vpop.f32.mrb[6].mxu0 }
0x117c   : > { %v1328_v31 = vadd.f32 %v1805_v29, %v1324_v30  ;;  %v1885_v32 = vpop.f32.mrb[7].mxu0 }
0x117e   : > { %2011 = vtanh.f32 %v1328_v31  ;;  %v1807_v34 = vmul.f32 -1.442695, %v1328_v31 }
0x1180   : > { %2013 = vpow2.f32 %v1807_v34 }
0x1188   : > { %v2012_v33 = vpop.eup %2011 }
0x1189   : > { %1338 = vrot.lane.b32.xlu1 %v2012_v33, %s2142_s15 }
0x118a   : > { %v2014_v35 = vpop.eup %2013 }
0x118b   : > { %v1332_v36 = vadd.f32 1.0, %v2014_v35 }
0x118d   : > { %2015 = vrcp.f32 %v1332_v36 }
0x1197   : > { %v2016_v37 = vpop.eup %2015 }
0x1198   : > { %v1336_v40 = vmul.f32 %v2016_v37, %v1238_v24 }
0x11fb   : > { %v1339_v38 = vpop.permute.xlu1 %1338 }
0x11fc   : > { %v1341_v39 = vmul.f32 %v2016_v37, %v1339_v38 }
0x11fe   : > { %1343 = vrot.lane.b32.xlu0 %v1341_v39, %s2143_s16 }
0x1270   : > { %v1344_v41 = vpop.permute.xlu0 %1343 }
0x1271   : > { %v1346_v42 = vadd.f32 %v1344_v41, %v1336_v40 }
0x1273   : > { %2017 = vtanh.f32 %v1346_v42 }
0x127d   : > { %v2018_v43 = vpop.eup %2017 }
0x127e   : > { %1349 = vrot.lane.b32.xlu1 %v2018_v43, %s2144_s17 }
0x12f0   : > { %v1350_v44 = vpop.permute.xlu1 %1349 }
0x12f1   : > { %v1352_v45 = vmul.f32 %v2016_v37, %v1350_v44 }
0x12f3   : > { %1354 = vrot.lane.b32.xlu0 %v1352_v45, %s2145_s18 }
0x1365   : > { %v1355_v46 = vpop.permute.xlu0 %1354 }
0x1366   : > { %1809 = vst.msk [vmem:[%s1659_s19 + $0xc] sm:$0x3] %vm401_vm0, %v1355_v46  ;;  %1889 = vmatmul.mubr.msk.f32.vlgmr.msra.gmra.mrb[8].mxu1 %vm603_vm3, %v1355_v46  ;;  %s1497_s19 = scalar_lea.sflag [#allocation8], %s2407_s12 }
0x1439   : > { %v1432_v48 = vpop.f32.mrb[8].mxu1 }
0x143a   : > { %v1436_v49 = vadd.f32 %v1811_v47, %v1432_v48  ;;  %v1890_v50 = vpop.f32.mrb[9].mxu1 }
0x143c   : > { %2019 = vtanh.f32 %v1436_v49  ;;  %v1813_v52 = vmul.f32 -1.442695, %v1436_v49 }
0x143e   : > { %2021 = vpow2.f32 %v1813_v52 }
0x1446   : > { %v2020_v51 = vpop.eup %2019 }
0x1447   : > { %1446 = vrot.lane.b32.xlu1 %v2020_v51, %s2142_s15  ;;  %s2146_s15 = smov 120  }
0x1448   : > { %v2022_v53 = vpop.eup %2021 }
0x1449   : > { %v1440_v54 = vadd.f32 1.0, %v2022_v53 }
0x144b   : > { %2023 = vrcp.f32 %v1440_v54 }
0x1455   : > { %v2024_v55 = vpop.eup %2023 }
0x1456   : > { %v1444_v58 = vmul.f32 %v2024_v55, %v1346_v42 }
0x14b9   : > { %v1447_v56 = vpop.permute.xlu1 %1446 }
0x14ba   : > { %v1449_v57 = vmul.f32 %v2024_v55, %v1447_v56 }
0x14bc   : > { %1451 = vrot.lane.b32.xlu0 %v1449_v57, %s2143_s16  ;;  %s352_s16 = scalar_lea.vmem [#allocation7], %s1764_s13 }
0x14bd   : > { %s1531_s20 = sshll.u32 %s352_s16, 4  ;;  %s2421_s20 = int_to_ptr.vmem [resolvable:$true] %s1531_s20 }
0x14be   : > { %s2027_s8 = scalar_lea.vmem %s2421_s20, 32 }
0x14bf   : > { %p2028_p12 = scmp.ne.s32.totalorder %s2421_s20, %s2027_s8 }
0x14c1   : > { %p2029_p13 = pnand %p2028_p12, %p2224_p4 }
0x14c3   : > { %p2030_p0 = pneg %p2029_p13 }
0x152e   : > { %v1452_v59 = vpop.permute.xlu0 %1451 }
0x152f   : > { %v1454_v60 = vadd.f32 %v1452_v59, %v1444_v58 }
0x1531   : > { %2025 = vtanh.f32 %v1454_v60 }
0x153b   : > { %v2026_v61 = vpop.eup %2025 }
0x153c   : > { %1457 = vrot.lane.b32.xlu1 %v2026_v61, %s2144_s17 }
0x1540   : > { %1469 = vrot.lane.b32.xlu1 %v1454_v60, %s2146_s15 }
0x15ae   : > { %v1458_v62 = vpop.permute.xlu1 %1457 }
0x15af   : > { %v1460_v63 = vmul.f32 %v2024_v55, %v1458_v62 }
0x15b1   : > { %1462 = vrot.lane.b32.xlu0 %v1460_v63, %s2145_s18  ;;  %s2147_s18 = smov [#allocation7]  }
0x15b2   : > { %v1470_v0 = vpop.permute.xlu1 %1469  ;;  %s2031_s15 = sshll.u32 %s2147_s18, 4  ;;  %s2032_s15 = int_to_ptr.vmem [resolvable:$false] %s2031_s15 }
0x15b3   : > { %1472 = vst.msk [vmem:[#allocation4] sm:$0x3] %vm401_vm0, %v1470_v0  ;;  %1477 = vst.msk [vmem:[%s352_s16] sm:$0x3] %vm401_vm0, %v1470_v0  ;;  %s2033_s27 = scalar_lea.vmem %s2032_s15, 64  ;;  %p2034_p1 = scmp.lt.s32.totalorder %s2421_s20, %s2032_s15 }
0x15b4   : > { %p2035_p2 = scmp.lt.s32.totalorder %s2033_s27, %s2027_s8 }
0x15b6   : > { %p2036_p3 = por %p2035_p2, %p2034_p1 }
0x15b8   : > { %p2037_p5 = pnand %p2036_p3, %p2030_p0 }
0x15ba   : > { %2040 = shalt.err (!%p2037_p5)
}
0x15bb   : > { %s2041_s16 = scalar_lea.hbm %s2419_s30, 32  ;;  %s2045_s18 = scalar_lea.hbm %s2514_s6, 64 }
0x15bc   : > { %p2042_p6 = scmp.ne.s32.totalorder %s2419_s30, %s2041_s16  ;;  %p2046_p10 = scmp.lt.u32.totalorder %s2419_s30, %s2514_s6 }
0x15bd   : > { %p2047_p11 = scmp.lt.u32.totalorder %s2045_s18, %s2041_s16  ;;  %p2049_p13 = scmp.lt.u32.totalorder %s2041_s16, %s2419_s30 }
0x15be   : > { %p2043_p7 = pnand %p2042_p6, %p2224_p4 }
0x15bf   : > { %p2048_p12 = por %p2047_p11, %p2046_p10 }
0x15c0   : > { %p2044_p9 = pneg %p2043_p7 }
0x15c1   : > { %p2050_p0 = por %p2049_p13, %p2048_p12 }
0x15c3   : > { %p2051_p1 = pnand %p2050_p0, %p2044_p9 }
0x15c5   : > { %2054 = shalt.err (!%p2051_p1)
}
0x15c6   : > { %1896 = dma.vmem_to_hbm [thread:$0]  (%p2224_p4), %s2421_s20, 32, %s2419_s30, %s1497_s19  }
0x15c7   : > { %s345_s11 = scalar_lea.vmem [#allocation5], %s1764_s13  ;;  %s2519_s8 = smul.u32 4294967282, %s2129_s24 }
0x15c8   : > { %s1518_s14 = sshll.u32 %s345_s11, 4  ;;  %s2520_s16 = sshll.u32 %s2129_s24, 5  ;;  %s2459_s14 = int_to_ptr.vmem [resolvable:$true] %s1518_s14 }
0x15c9   : > { %s1667_s27 = scalar_lea.vmem %s2323_s28, %s2519_s8  ;;  %s2457_s15 = scalar_lea.hbm %s2513_s5, %s2520_s16 }
0x15ca   : > { %s1492_s13 = scalar_lea.sflag [#allocation6], %s2407_s12  ;;  %s2055_s28 = scalar_lea.vmem %s2459_s14, 32 }
0x15cb   : > { %p2056_p2 = scmp.ne.s32.totalorder %s2459_s14, %s2055_s28  ;;  %s2148_s24 = smov [#allocation5]  }
0x15cc   : > { %s2059_s20 = sshll.u32 %s2148_s24, 4  ;;  %s2060_s20 = int_to_ptr.vmem [resolvable:$false] %s2059_s20 }
0x15cd   : > { %p2057_p3 = pnand %p2056_p2, %p2224_p4  ;;  %s2061_s30 = scalar_lea.vmem %s2060_s20, 64 }
0x15ce   : > { %p2062_p6 = scmp.lt.s32.totalorder %s2459_s14, %s2060_s20  ;;  %p2063_p7 = scmp.lt.s32.totalorder %s2061_s30, %s2055_s28 }
0x15cf   : > { %p2058_p5 = pneg %p2057_p3 }
0x15d0   : > { %p2064_p9 = por %p2063_p7, %p2062_p6 }
0x15d2   : > { %p2065_p10 = pnand %p2064_p9, %p2058_p5 }
0x1623   : > { %v1463_v1 = vpop.permute.xlu0 %1462 }
0x1624   : > { %1815 = vst.msk [vmem:[%s1667_s27 + $0xe] sm:$0x3] %vm401_vm0, %v1463_v1  ;;  %1467 = vst.msk [vmem:[#allocation3] sm:$0x3] %vm401_vm0, %v1463_v1 }
0x1625   : > { %1476 = vst.msk [vmem:[%s345_s11] sm:$0x3] %vm401_vm0, %v1463_v1 }
0x1626   : > { %2068 = shalt.err (!%p2065_p10)
}
0x1627   : > { %s2069_s12 = scalar_lea.hbm %s2457_s15, 32  ;;  %s2073_s8 = scalar_lea.hbm %s2513_s5, 64 }
0x1628   : > { %p2070_p11 = scmp.ne.s32.totalorder %s2457_s15, %s2069_s12  ;;  %p2074_p0 = scmp.lt.u32.totalorder %s2457_s15, %s2513_s5 }
0x1629   : > { %p2075_p1 = scmp.lt.u32.totalorder %s2073_s8, %s2069_s12  ;;  %p2077_p3 = scmp.lt.u32.totalorder %s2069_s12, %s2457_s15 }
0x162a   : > { %p2071_p12 = pnand %p2070_p11, %p2224_p4 }
0x162b   : > { %p2076_p2 = por %p2075_p1, %p2074_p0 }
0x162c   : > { %p2072_p13 = pneg %p2071_p12 }
0x162d   : > { %p2078_p5 = por %p2077_p3, %p2076_p2 }
0x162f   : > { %p2079_p6 = pnand %p2078_p5, %p2072_p13 }
0x1631   : > { %2082 = shalt.err (!%p2079_p6)
}
0x1632   : > { %1895 = dma.vmem_to_hbm [thread:$0]  (%p2224_p4), %s2459_s14, 32, %s2457_s15, %s1492_s13  }
0x1633 PF: > { %p1906_p7 = scmp.ge.s32.totalorder %s2137_s26, 2  ;;  %s1559_s17 = sand.u32 1, %s2117_s21  }
0x1634   : > { %s1560_s18 = scalar_lea.sflag [#allocation6], %s1559_s17 }
0x1635   : > { %p1900_p9 = pnand %p1906_p7, %p2231_p8 }
0x1637   : > { %2108 = dma.done.wait (!%p1900_p9), %s1560_s18, 32  }
0x1638   : > { %2110 = vsyncadd (!%p1900_p9), %s1560_s18, 4294967264  ;;  %s1569_s28 = scalar_lea.sflag [#allocation8], %s1559_s17 }
0x1639   : > { %2112 = dma.done.wait (!%p1900_p9), %s1569_s28, 32  }
0x163a   : > { %2114 = vsyncadd (!%p1900_p9), %s1569_s28, 4294967264  ;;  %s23_s26 = sadd.s32 1, %s2137_s26   ;;  %s2521_s21 = smov %s2121_s22 }
0x163b   : > { %p20_p10 = scmp.ge.s32.totalorder %s23_s26, 4   ;;  %s2522_s22 = smov %s2125_s23 }
0x163c   : > { %s2523_s23 = smov %s2237_s10  ;;  %s2524_s24 = smov %s2133_s25 }
0x163d   : > { %s2525_s25 = smov %s2527_s29  ;;  %22 = sbr.rel (!%p20_p10) target bundleno = 6 (0x6), region = 133 }
0x1644   :  { %1574 = vsyncpa [#allocation6], 1 }
0x1645   :  { %1576 = vsyncpa [#allocation6 + $0x1], 1 }
0x1646   :  { %1577 = vsyncpa [#allocation8], 1 }
0x1647   :  { %1579 = vsyncpa [#allocation8 + $0x1], 1 }

</bundles_post_ra>
